<compile_context>
chip_gen: v7x
topology: tpu7x:2x2x1
jax: 0.10.0
libtpu: 0.0.40
codegen_flags: <defaults>
</compile_context>

<pallas_src>
import math

import jax
import jax.numpy as jnp
from jax.experimental import pallas as pl
from jax.experimental.pallas import tpu as pltpu

SCALE = math.sqrt(0.5)


# ---------------------------------------------------------------------------
# Helpers
# ---------------------------------------------------------------------------
def _pick_tile(dim, prefs):
    for p in prefs:
        if dim % p == 0:
            return p
    return dim


def _clamp_vmem(nbytes):
    # double-buffer headroom, clamped to [16 MiB, 64 MiB] (v7x physical VMEM)
    return int(min(max(2 * nbytes + (4 << 20), 16 << 20), 64 << 20))


# ---------------------------------------------------------------------------
# Generic tiled linear:  (M, Kc) @ (Kc, N) + b     bf16 MXU, f32 accumulation
# ---------------------------------------------------------------------------
def _linear_kernel(x_ref, w_ref, b_ref, o_ref, acc_ref):
    kk = pl.program_id(2)

    @pl.when(kk == 0)
    def _():
        acc_ref[...] = jnp.zeros_like(acc_ref)

    acc_ref[...] += jnp.dot(x_ref[...], w_ref[...],
                            preferred_element_type=jnp.float32)

    @pl.when(kk == pl.num_programs(2) - 1)
    def _():
        o_ref[...] = (acc_ref[...] + b_ref[...]).astype(o_ref.dtype)


def _linear_combine_kernel(x_ref, w_ref, b_ref, add_ref, o1_ref, o2_ref,
                           acc_ref):
    # Encoder head: conved = x @ w + b ; combined = (conved + emb) * SCALE
    kk = pl.program_id(2)

    @pl.when(kk == 0)
    def _():
        acc_ref[...] = jnp.zeros_like(acc_ref)

    acc_ref[...] += jnp.dot(x_ref[...], w_ref[...],
                            preferred_element_type=jnp.float32)

    @pl.when(kk == pl.num_programs(2) - 1)
    def _():
        conved = acc_ref[...] + b_ref[...]
        o1_ref[...] = conved.astype(o1_ref.dtype)
        o2_ref[...] = ((conved + add_ref[...]) * SCALE).astype(o2_ref.dtype)


def _linear_call(kernel, x, w, b, extra=None, n_out=1):
    M, Kc = x.shape
    N = w.shape[1]
    tm = _pick_tile(M, (256, 128, 64, 32, 16, 8))
    tn = _pick_tile(N, (512, 256, 128))
    tk = _pick_tile(Kc, (512, 256, 128))
    grid = (M // tm, N // tn, Kc // tk)

    in_specs = [pl.BlockSpec((tm, tk), lambda i, j, k: (i, k)),
                pl.BlockSpec((tk, tn), lambda i, j, k: (k, j)),
                pl.BlockSpec((1, tn), lambda i, j, k: (0, j))]
    ins = [x.astype(jnp.bfloat16), w.astype(jnp.bfloat16), b]
    if extra is not None:
        in_specs.append(pl.BlockSpec((tm, tn), lambda i, j, k: (i, j)))
        ins.append(extra)

    out_spec = pl.BlockSpec((tm, tn), lambda i, j, k: (i, j))
    if n_out == 1:
        out_shape = jax.ShapeDtypeStruct((M, N), jnp.float32)
        out_specs = out_spec
    else:
        out_shape = tuple(jax.ShapeDtypeStruct((M, N), jnp.float32)
                          for _ in range(n_out))
        out_specs = tuple(out_spec for _ in range(n_out))

    est = 2 * (tm * tk + tk * tn) * 2 + tn * 4 + (n_out + 1) * tm * tn * 4
    if extra is not None:
        est += 2 * tm * tn * 4

    return pl.pallas_call(
        kernel,
        out_shape=out_shape,
        grid_spec=pltpu.PrefetchScalarGridSpec(
            num_scalar_prefetch=0, grid=grid,
            in_specs=in_specs, out_specs=out_specs,
            scratch_shapes=[pltpu.VMEM((tm, tn), jnp.float32)]),
        compiler_params=pltpu.CompilerParams(
            dimension_semantics=("parallel", "parallel", "arbitrary"),
            vmem_limit_bytes=_clamp_vmem(est)),
    )(*ins)


def linear(x, w, b):
    return _linear_call(_linear_kernel, x, w, b)


def linear_combine(x, w, b, add):
    return _linear_call(_linear_combine_kernel, x, w, b, extra=add, n_out=2)


# ---------------------------------------------------------------------------
# Encoder conv stack: grid = (batch, layer); x carried in padded VMEM scratch
# ---------------------------------------------------------------------------
def _enc_stack_kernel(x0_ref, wa_ref, wg_ref, ba_ref, bg_ref,
                      xout_ref, xpad_ref):
    layer = pl.program_id(1)
    L, H = x0_ref.shape[1], x0_ref.shape[2]
    K = wa_ref.shape[1] // H
    pad = (K - 1) // 2          # torch Conv1d(padding=(K-1)//2), odd K

    @pl.when(layer == 0)
    def _():
        xpad_ref[...] = jnp.zeros_like(xpad_ref)        # zero halo once per b
        xpad_ref[:, pad:pad + L, :] = x0_ref[...]

    x = xpad_ref[:, pad:pad + L, :].reshape(L, H)       # f32 conv_input
    # im2col: all K taps fused into one deep-K matmul per GLU half
    slab = jnp.concatenate(
        [xpad_ref[:, k:k + L, :].reshape(L, H) for k in range(K)],
        axis=-1).astype(jnp.bfloat16)                   # [L, K*H]
    a = jnp.dot(slab, wa_ref[0], preferred_element_type=jnp.float32) + ba_ref[0]
    g = jnp.dot(slab, wg_ref[0], preferred_element_type=jnp.float32) + bg_ref[0]
    x_new = (a * jax.nn.sigmoid(g) + x) * SCALE         # GLU + residual, f32
    xpad_ref[:, pad:pad + L, :] = x_new.reshape(1, L, H)

    @pl.when(layer == pl.num_programs(1) - 1)
    def _():
        xout_ref[...] = x_new.reshape(1, L, H)


def conv_stack_encoder(x0, p):
    B, L, H = x0.shape
    wa, wg = p['conv_wa'], p['conv_wg']
    n_layers, KH = wa.shape[0], wa.shape[1]
    K = KH // H
    est = (2 * L * H * 4 + 4 * KH * H * 2 + 4 * H * 4
           + 2 * L * H * 4 + (L + K - 1) * H * 4)
    return pl.pallas_call(
        _enc_stack_kernel,
        out_shape=jax.ShapeDtypeStruct((B, L, H), jnp.float32),
        grid_spec=pltpu.PrefetchScalarGridSpec(
            num_scalar_prefetch=0, grid=(B, n_layers),
            in_specs=[
                pl.BlockSpec((1, L, H), lambda b, l: (b, 0, 0)),    # x0
                pl.BlockSpec((1, KH, H), lambda b, l: (l, 0, 0)),   # w value half
                pl.BlockSpec((1, KH, H), lambda b, l: (l, 0, 0)),   # w gate half
                pl.BlockSpec((1, 1, H), lambda b, l: (l, 0, 0)),    # b value half
                pl.BlockSpec((1, 1, H), lambda b, l: (l, 0, 0)),    # b gate half
            ],
            out_specs=pl.BlockSpec((1, L, H), lambda b, l: (b, 0, 0)),
            scratch_shapes=[pltpu.VMEM((1, L + K - 1, H), jnp.float32)]),
        compiler_params=pltpu.CompilerParams(
            dimension_semantics=("parallel", "arbitrary"),
            vmem_limit_bytes=_clamp_vmem(est)),
    )(x0, wa.astype(jnp.bfloat16), wg.astype(jnp.bfloat16),
      p['conv_ba'], p['conv_bg'])


# ---------------------------------------------------------------------------
# Decoder conv stack (causal conv + GLU + attention), grid = (batch, layer)
# ---------------------------------------------------------------------------
def _dec_stack_kernel(x0_ref, emb_ref, encc_ref, encz_ref,
                      wa_ref, wg_ref, ba_ref, bg_ref,
                      wah_ref, bah_ref, wae_ref, bae_ref,
                      xout_ref, attn_ref, xpad_ref):
    layer = pl.program_id(1)
    Lt, H = x0_ref.shape[1], x0_ref.shape[2]
    E = emb_ref.shape[2]
    Ls = encc_ref.shape[1]
    K = wa_ref.shape[1] // H
    off = K - 1                 # causal padding: K-1 zeros prepended

    @pl.when(layer == 0)
    def _():
        xpad_ref[...] = jnp.zeros_like(xpad_ref)
        xpad_ref[:, off:off + Lt, :] = x0_ref[...]

    x = xpad_ref[:, off:off + Lt, :].reshape(Lt, H)     # f32 conv_input
    slab = jnp.concatenate(
        [xpad_ref[:, k:k + Lt, :].reshape(Lt, H) for k in range(K)],
        axis=-1).astype(jnp.bfloat16)                   # [Lt, K*H]
    a = jnp.dot(slab, wa_ref[0], preferred_element_type=jnp.float32) + ba_ref[0]
    gt = jnp.dot(slab, wg_ref[0], preferred_element_type=jnp.float32) + bg_ref[0]
    g = a * jax.nn.sigmoid(gt)                          # GLU output, f32 [Lt,H]

    # ---- attention (Decoder.calculate_attention) ----
    emb = emb_ref[0]                                    # [Lt, E] f32
    ce = jnp.dot(g.astype(jnp.bfloat16), wah_ref[...],
                 preferred_element_type=jnp.float32) + bah_ref[...]
    combined = (ce + emb) * SCALE                       # [Lt, E] f32
    energy = jnp.einsum('te,se->ts', combined.astype(jnp.bfloat16),
                        encc_ref[0], preferred_element_type=jnp.float32)
    m = jnp.max(energy, axis=-1, keepdims=True)
    pexp = jnp.exp(energy - m)
    attn = pexp * pl.reciprocal(jnp.sum(pexp, axis=-1, keepdims=True),
                                approx=True)            # softmax [Lt, Ls]
    attended = jnp.dot(attn.astype(jnp.bfloat16), encz_ref[0],
                       preferred_element_type=jnp.float32)       # [Lt, E]
    ah = jnp.dot(attended.astype(jnp.bfloat16), wae_ref[...],
                 preferred_element_type=jnp.float32) + bae_ref[...]
    g = (g + ah) * SCALE                                # attended_combined
    x_new = (g + x) * SCALE                             # residual
    xpad_ref[:, off:off + Lt, :] = x_new.reshape(1, Lt, H)

    @pl.when(layer == pl.num_programs(1) - 1)
    def _():
        xout_ref[...] = x_new.reshape(1, Lt, H)
        attn_ref[...] = attn.reshape(1, Lt, Ls)         # last layer's attention


def conv_stack_decoder(x0, emb, enc_conved, enc_combined, p):
    B, Lt, H = x0.shape
    E = emb.shape[2]
    Ls = enc_conved.shape[1]
    wa, wg = p['conv_wa'], p['conv_wg']
    n_layers, KH = wa.shape[0], wa.shape[1]
    K = KH // H
    est = (2 * Lt * H * 4 + 2 * Lt * E * 4 + 4 * Ls * E * 2
           + 4 * KH * H * 2 + 4 * H * 4
           + 2 * (H * E + E * H) * 2 + (E + H) * 4
           + 2 * Lt * H * 4 + 2 * Lt * Ls * 4
           + (Lt + K - 1) * H * 4)
    return pl.pallas_call(
        _dec_stack_kernel,
        out_shape=(jax.ShapeDtypeStruct((B, Lt, H), jnp.float32),
                   jax.ShapeDtypeStruct((B, Lt, Ls), jnp.float32)),
        grid_spec=pltpu.PrefetchScalarGridSpec(
            num_scalar_prefetch=0, grid=(B, n_layers),
            in_specs=[
                pl.BlockSpec((1, Lt, H), lambda b, l: (b, 0, 0)),   # x0
                pl.BlockSpec((1, Lt, E), lambda b, l: (b, 0, 0)),   # trg emb
                pl.BlockSpec((1, Ls, E), lambda b, l: (b, 0, 0)),   # enc conved
                pl.BlockSpec((1, Ls, E), lambda b, l: (b, 0, 0)),   # enc combined
                pl.BlockSpec((1, KH, H), lambda b, l: (l, 0, 0)),   # conv w value
                pl.BlockSpec((1, KH, H), lambda b, l: (l, 0, 0)),   # conv w gate
                pl.BlockSpec((1, 1, H), lambda b, l: (l, 0, 0)),    # conv b value
                pl.BlockSpec((1, 1, H), lambda b, l: (l, 0, 0)),    # conv b gate
                pl.BlockSpec((H, E), lambda b, l: (0, 0)),          # w_ah2e
                pl.BlockSpec((1, E), lambda b, l: (0, 0)),          # b_ah2e
                pl.BlockSpec((E, H), lambda b, l: (0, 0)),          # w_ae2h
                pl.BlockSpec((1, H), lambda b, l: (0, 0)),          # b_ae2h
            ],
            out_specs=(pl.BlockSpec((1, Lt, H), lambda b, l: (b, 0, 0)),
                       pl.BlockSpec((1, Lt, Ls), lambda b, l: (b, 0, 0))),
            scratch_shapes=[pltpu.VMEM((1, Lt + K - 1, H), jnp.float32)]),
        compiler_params=pltpu.CompilerParams(
            dimension_semantics=("parallel", "arbitrary"),
            vmem_limit_bytes=_clamp_vmem(est)),
    )(x0, emb, enc_conved.astype(jnp.bfloat16), enc_combined.astype(jnp.bfloat16),
      wa.astype(jnp.bfloat16), wg.astype(jnp.bfloat16),
      p['conv_ba'], p['conv_bg'],
      p['w_ah2e'].astype(jnp.bfloat16), p['b_ah2e'],
      p['w_ae2h'].astype(jnp.bfloat16), p['b_ae2h'])


# ---------------------------------------------------------------------------
# Module wrappers (match Encoder / Decoder / Seq2Seq forward semantics)
# ---------------------------------------------------------------------------
def encoder_forward(src_emb, p):
    B, Ls, E = src_emb.shape
    H = p['w_e2h'].shape[1]
    x0 = linear(src_emb.reshape(B * Ls, E), p['w_e2h'], p['b_e2h'])
    x = conv_stack_encoder(x0.reshape(B, Ls, H), p)
    conved, combined = linear_combine(x.reshape(B * Ls, H), p['w_h2e'],
                                      p['b_h2e'], src_emb.reshape(B * Ls, E))
    return conved.reshape(B, Ls, E), combined.reshape(B, Ls, E)


def decoder_forward(trg_emb, enc_conved, enc_combined, p):
    B, Lt, E = trg_emb.shape
    H = p['w_e2h'].shape[1]
    V = p['w_out'].shape[1]
    x0 = linear(trg_emb.reshape(B * Lt, E), p['w_e2h'], p['b_e2h'])
    x, attn = conv_stack_decoder(x0.reshape(B, Lt, H), trg_emb,
                                 enc_conved, enc_combined, p)
    conved = linear(x.reshape(B * Lt, H), p['w_h2e'], p['b_h2e'])
    out = linear(conved, p['w_out'], p['b_out'])     # tiled fc_out over vocab
    return out.reshape(B, Lt, V), attn


def seq2seq_forward(params, src, trg):
    """Seq2Seq.forward(src, trg) -> (output, attention)."""
    enc, dec = params['encoder'], params['decoder']
    B, Ls = src.shape
    _, Lt = trg.shape
    # embedding lookups: plain JAX gather glue (outside the kernels)
    src_emb = enc['tok_emb'][src] + enc['pos_emb'][jnp.arange(Ls)][None, :, :]
    enc_conved, enc_combined = encoder_forward(src_emb.astype(jnp.float32), enc)
    trg_emb = dec['tok_emb'][trg] + dec['pos_emb'][jnp.arange(Lt)][None, :, :]
    output, attention = decoder_forward(trg_emb.astype(jnp.float32),
                                        enc_conved, enc_combined, dec)
    return output, attention


# ---------------------------------------------------------------------------
# Deterministic synthetic parameters (shapes per the torch module __init__).
# torch Conv1d weight [2H, H_in, K] maps to the two flattened GLU halves:
#   conv_wa[l, k*H + cin, cout] = W[cout,        cin, k]   (value half)
#   conv_wg[l, k*H + cin, cout] = W[H + cout,    cin, k]   (gate  half)
# Linear weights are stored transposed ([in, out]).
# ---------------------------------------------------------------------------
def init_params(key, *, input_dim, output_dim, emb_dim, hid_dim, n_layers,
                kernel_size, max_length):
    keys = iter(jax.random.split(key, 32))

    def w(shape, scale=0.1):
        return jax.random.normal(next(keys), shape, jnp.float32) * scale

    kh = kernel_size * hid_dim
    encoder = dict(
        tok_emb=w((input_dim, emb_dim)),
        pos_emb=w((max_length, emb_dim)),
        w_e2h=w((emb_dim, hid_dim)), b_e2h=w((1, hid_dim)),
        conv_wa=w((n_layers, kh, hid_dim)), conv_wg=w((n_layers, kh, hid_dim)),
        conv_ba=w((n_layers, 1, hid_dim)), conv_bg=w((n_layers, 1, hid_dim)),
        w_h2e=w((hid_dim, emb_dim)), b_h2e=w((1, emb_dim)),
    )
    decoder = dict(
        tok_emb=w((output_dim, emb_dim)),
        pos_emb=w((max_length, emb_dim)),
        w_e2h=w((emb_dim, hid_dim)), b_e2h=w((1, hid_dim)),
        conv_wa=w((n_layers, kh, hid_dim)), conv_wg=w((n_layers, kh, hid_dim)),
        conv_ba=w((n_layers, 1, hid_dim)), conv_bg=w((n_layers, 1, hid_dim)),
        w_ah2e=w((hid_dim, emb_dim)), b_ah2e=w((1, emb_dim)),
        w_ae2h=w((emb_dim, hid_dim)), b_ae2h=w((1, hid_dim)),
        w_h2e=w((hid_dim, emb_dim)), b_h2e=w((1, emb_dim)),
        w_out=w((emb_dim, output_dim)), b_out=w((1, output_dim)),
    )
    return dict(encoder=encoder, decoder=decoder)


if __name__ == "__main__":
    # Small but lane-aligned shapes (E = H = 128 lanes, vocab = 256).
    B, SRC_LEN, TRG_LEN = 2, 16, 16
    INPUT_DIM = OUTPUT_DIM = 256
    EMB_DIM = HID_DIM = 128
    N_LAYERS, KERNEL_SIZE, MAX_LEN = 2, 3, 32

    key = jax.random.PRNGKey(0)
    kp, ks, kt = jax.random.split(key, 3)
    params = init_params(kp, input_dim=INPUT_DIM, output_dim=OUTPUT_DIM,
                         emb_dim=EMB_DIM, hid_dim=HID_DIM, n_layers=N_LAYERS,
                         kernel_size=KERNEL_SIZE, max_length=MAX_LEN)
    src = jax.random.randint(ks, (B, SRC_LEN), 0, INPUT_DIM, dtype=jnp.int32)
    trg = jax.random.randint(kt, (B, TRG_LEN), 0, OUTPUT_DIM, dtype=jnp.int32)

    output, attention = jax.jit(seq2seq_forward)(params, src, trg)
    jax.block_until_ready((output, attention))

    assert output.shape == (B, TRG_LEN, OUTPUT_DIM), output.shape
    assert attention.shape == (B, TRG_LEN, SRC_LEN), attention.shape
    assert bool(jnp.all(jnp.isfinite(output)))
    assert bool(jnp.all(jnp.isfinite(attention)))
    # attention rows ~sum to 1 (approx reciprocal in softmax)
    assert bool(jnp.all(jnp.abs(jnp.sum(attention, -1) - 1.0) < 1e-2))
    print("KERNEL_OK")
</pallas_src>

<mosaic_0001>
module attributes {stable_mosaic.version = 11 : i64} {
  func.func @_enc_stack_kernel(%arg0: i32, %arg1: i32, %arg2: memref<1x16x128xf32, #tpu.memory_space<vmem>>, %arg3: memref<1x384x128xbf16, #tpu.memory_space<vmem>>, %arg4: memref<1x384x128xbf16, #tpu.memory_space<vmem>>, %arg5: memref<1x1x128xf32, #tpu.memory_space<vmem>>, %arg6: memref<1x1x128xf32, #tpu.memory_space<vmem>>, %arg7: memref<1x16x128xf32, #tpu.memory_space<vmem>>, %arg8: memref<1x18x128xf32, #tpu.memory_space<vmem>>) attributes {dimension_semantics = [#tpu.dimension_semantics<parallel>, #tpu.dimension_semantics<arbitrary>], iteration_bounds = array<i64: 2, 2>, scalar_prefetch = 0 : i64, scratch_operands = 1 : i64, tpu.core_type = #tpu.core_type<tc>, window_params = [{transform_indices = @transform_0, window_bounds = array<i64: 1, 16, 128>}, {transform_indices = @transform_1, window_bounds = array<i64: 1, 384, 128>}, {transform_indices = @transform_2, window_bounds = array<i64: 1, 384, 128>}, {transform_indices = @transform_3, window_bounds = array<i64: 1, 1, 128>}, {transform_indices = @transform_4, window_bounds = array<i64: 1, 1, 128>}, {transform_indices = @transform_5, window_bounds = array<i64: 1, 16, 128>}]} {
    %c0_i32 = arith.constant 0 : i32
    %0 = arith.cmpi eq, %arg1, %c0_i32 : i32
    %1 = arith.extui %0 : i1 to i32
    %c0_i32_0 = arith.constant 0 : i32
    %2 = arith.cmpi ne, %1, %c0_i32_0 : i32
    scf.if %2 {
      %cst_29 = arith.constant 0.000000e+00 : f32
      %41 = vector.broadcast %cst_29 : f32 to vector<1x18x128xf32>
      %c0_30 = arith.constant 0 : index
      %c0_31 = arith.constant 0 : index
      %c0_32 = arith.constant 0 : index
      %42 = vector.load %arg8[%c0_30, %c0_31, %c0_32] : memref<1x18x128xf32, #tpu.memory_space<vmem>>, vector<1x18x128xf32>
      tpu.vector_store %arg8[%c0_30, %c0_31, %c0_32], %41 {strides = array<i32>} : memref<1x18x128xf32, #tpu.memory_space<vmem>>, vector<1x18x128xf32>,
      %c0_33 = arith.constant 0 : index
      %c0_34 = arith.constant 0 : index
      %c0_35 = arith.constant 0 : index
      %43 = vector.load %arg2[%c0_33, %c0_34, %c0_35] : memref<1x16x128xf32, #tpu.memory_space<vmem>>, vector<1x16x128xf32>
      %c0_36 = arith.constant 0 : index
      %c1_37 = arith.constant 1 : index
      %c0_38 = arith.constant 0 : index
      %44 = vector.load %arg8[%c0_36, %c1_37, %c0_38] : memref<1x18x128xf32, #tpu.memory_space<vmem>>, vector<1x16x128xf32>
      tpu.vector_store %arg8[%c0_36, %c1_37, %c0_38], %43 {strides = array<i32>} : memref<1x18x128xf32, #tpu.memory_space<vmem>>, vector<1x16x128xf32>,
    } else {
    }
    %c0 = arith.constant 0 : index
    %c1 = arith.constant 1 : index
    %c0_1 = arith.constant 0 : index
    %3 = vector.load %arg8[%c0, %c1, %c0_1] : memref<1x18x128xf32, #tpu.memory_space<vmem>>, vector<1x16x128xf32>
    %4 = vector.shape_cast %3 : vector<1x16x128xf32> to vector<16x128xf32>
    %c0_2 = arith.constant 0 : index
    %c0_3 = arith.constant 0 : index
    %c0_4 = arith.constant 0 : index
    %5 = vector.load %arg8[%c0_2, %c0_3, %c0_4] : memref<1x18x128xf32, #tpu.memory_space<vmem>>, vector<1x16x128xf32>
    %6 = vector.shape_cast %5 : vector<1x16x128xf32> to vector<16x128xf32>
    %c0_5 = arith.constant 0 : index
    %c1_6 = arith.constant 1 : index
    %c0_7 = arith.constant 0 : index
    %7 = vector.load %arg8[%c0_5, %c1_6, %c0_7] : memref<1x18x128xf32, #tpu.memory_space<vmem>>, vector<1x16x128xf32>
    %8 = vector.shape_cast %7 : vector<1x16x128xf32> to vector<16x128xf32>
    %c0_8 = arith.constant 0 : index
    %c2 = arith.constant 2 : index
    %c0_9 = arith.constant 0 : index
    %9 = vector.load %arg8[%c0_8, %c2, %c0_9] : memref<1x18x128xf32, #tpu.memory_space<vmem>>, vector<1x16x128xf32>
    %10 = vector.shape_cast %9 : vector<1x16x128xf32> to vector<16x128xf32>
    %11 = tpu.concatenate %6, %8, %10 in 1 : vector<16x128xf32>, vector<16x128xf32>, vector<16x128xf32> -> vector<16x384xf32>
    %12 = arith.truncf %11 : vector<16x384xf32> to vector<16x384xbf16>
    %c0_10 = arith.constant 0 : index
    %c0_11 = arith.constant 0 : index
    %c0_12 = arith.constant 0 : index
    %13 = vector.load %arg3[%c0_10, %c0_11, %c0_12] : memref<1x384x128xbf16, #tpu.memory_space<vmem>>, vector<1x384x128xbf16>
    %14 = vector.shape_cast %13 : vector<1x384x128xbf16> to vector<384x128xbf16>
    %cst = arith.constant dense<0.000000e+00> : vector<16x128xf32>
    %15 = tpu.matmul %12, %14, %cst {dimension_numbers = #tpu.dot_dimension_numbers<[1], [0], [0], [1], [0, 0, 1, 1], [], []>} : vector<16x384xbf16>, vector<384x128xbf16>, vector<16x128xf32> -> vector<16x128xf32>
    %c0_13 = arith.constant 0 : index
    %c0_14 = arith.constant 0 : index
    %c0_15 = arith.constant 0 : index
    %16 = vector.load %arg5[%c0_13, %c0_14, %c0_15] : memref<1x1x128xf32, #tpu.memory_space<vmem>>, vector<1x1x128xf32>
    %17 = vector.shape_cast %16 : vector<1x1x128xf32> to vector<1x128xf32>
    %18 = vector.broadcast %17 : vector<1x128xf32> to vector<16x128xf32>
    %19 = arith.addf %15, %18 : vector<16x128xf32>
    %c0_16 = arith.constant 0 : index
    %c0_17 = arith.constant 0 : index
    %c0_18 = arith.constant 0 : index
    %20 = vector.load %arg4[%c0_16, %c0_17, %c0_18] : memref<1x384x128xbf16, #tpu.memory_space<vmem>>, vector<1x384x128xbf16>
    %21 = vector.shape_cast %20 : vector<1x384x128xbf16> to vector<384x128xbf16>
    %cst_19 = arith.constant dense<0.000000e+00> : vector<16x128xf32>
    %22 = tpu.matmul %12, %21, %cst_19 {dimension_numbers = #tpu.dot_dimension_numbers<[1], [0], [0], [1], [0, 0, 1, 1], [], []>} : vector<16x384xbf16>, vector<384x128xbf16>, vector<16x128xf32> -> vector<16x128xf32>
    %c0_20 = arith.constant 0 : index
    %c0_21 = arith.constant 0 : index
    %c0_22 = arith.constant 0 : index
    %23 = vector.load %arg6[%c0_20, %c0_21, %c0_22] : memref<1x1x128xf32, #tpu.memory_space<vmem>>, vector<1x1x128xf32>
    %24 = vector.shape_cast %23 : vector<1x1x128xf32> to vector<1x128xf32>
    %25 = vector.broadcast %24 : vector<1x128xf32> to vector<16x128xf32>
    %26 = arith.addf %22, %25 : vector<16x128xf32>
    %27 = arith.negf %26 : vector<16x128xf32>
    %28 = math.exp %27 : vector<16x128xf32>
    %cst_23 = arith.constant 1.000000e+00 : f32
    %29 = vector.broadcast %cst_23 : f32 to vector<16x128xf32>
    %30 = arith.addf %29, %28 : vector<16x128xf32>
    %31 = arith.divf %29, %30 : vector<16x128xf32>
    %32 = arith.mulf %19, %31 : vector<16x128xf32>
    %33 = arith.addf %32, %4 : vector<16x128xf32>
    %cst_24 = arith.constant 0.707106769 : f32
    %34 = vector.broadcast %cst_24 : f32 to vector<16x128xf32>
    %35 = arith.mulf %33, %34 : vector<16x128xf32>
    %36 = vector.shape_cast %35 : vector<16x128xf32> to vector<1x16x128xf32>
    %c0_25 = arith.constant 0 : index
    %c1_26 = arith.constant 1 : index
    %c0_27 = arith.constant 0 : index
    %37 = vector.load %arg8[%c0_25, %c1_26, %c0_27] : memref<1x18x128xf32, #tpu.memory_space<vmem>>, vector<1x16x128xf32>
    tpu.vector_store %arg8[%c0_25, %c1_26, %c0_27], %36 {strides = array<i32>} : memref<1x18x128xf32, #tpu.memory_space<vmem>>, vector<1x16x128xf32>,
    %c1_i32 = arith.constant 1 : i32
    %38 = arith.cmpi eq, %arg1, %c1_i32 : i32
    %39 = arith.extui %38 : i1 to i32
    %c0_i32_28 = arith.constant 0 : i32
    %40 = arith.cmpi ne, %39, %c0_i32_28 : i32
    scf.if %40 {
      %41 = vector.shape_cast %35 : vector<16x128xf32> to vector<1x16x128xf32>
      %c0_29 = arith.constant 0 : index
      %c0_30 = arith.constant 0 : index
      %c0_31 = arith.constant 0 : index
      %42 = vector.load %arg7[%c0_29, %c0_30, %c0_31] : memref<1x16x128xf32, #tpu.memory_space<vmem>>, vector<1x16x128xf32>
      tpu.vector_store %arg7[%c0_29, %c0_30, %c0_31], %41 {strides = array<i32>} : memref<1x16x128xf32, #tpu.memory_space<vmem>>, vector<1x16x128xf32>,
    } else {
    }
    return
  }
  func.func @transform_0(%arg0: i32, %arg1: i32) -> (i32, i32, i32) {
    %c0_i32 = arith.constant 0 : i32
    %c0_i32_0 = arith.constant 0 : i32
    %c0_i32_1 = arith.constant 0 : i32
    return %arg0, %c0_i32, %c0_i32_0 : i32, i32, i32
  }
  func.func @transform_1(%arg0: i32, %arg1: i32) -> (i32, i32, i32) {
    %c0_i32 = arith.constant 0 : i32
    %c0_i32_0 = arith.constant 0 : i32
    %c0_i32_1 = arith.constant 0 : i32
    return %arg1, %c0_i32, %c0_i32_0 : i32, i32, i32
  }
  func.func @transform_2(%arg0: i32, %arg1: i32) -> (i32, i32, i32) {
    %c0_i32 = arith.constant 0 : i32
    %c0_i32_0 = arith.constant 0 : i32
    %c0_i32_1 = arith.constant 0 : i32
    return %arg1, %c0_i32, %c0_i32_0 : i32, i32, i32
  }
  func.func @transform_3(%arg0: i32, %arg1: i32) -> (i32, i32, i32) {
    %c0_i32 = arith.constant 0 : i32
    %c0_i32_0 = arith.constant 0 : i32
    %c0_i32_1 = arith.constant 0 : i32
    return %arg1, %c0_i32, %c0_i32_0 : i32, i32, i32
  }
  func.func @transform_4(%arg0: i32, %arg1: i32) -> (i32, i32, i32) {
    %c0_i32 = arith.constant 0 : i32
    %c0_i32_0 = arith.constant 0 : i32
    %c0_i32_1 = arith.constant 0 : i32
    return %arg1, %c0_i32, %c0_i32_0 : i32, i32, i32
  }
  func.func @transform_5(%arg0: i32, %arg1: i32) -> (i32, i32, i32) {
    %c0_i32 = arith.constant 0 : i32
    %c0_i32_0 = arith.constant 0 : i32
    %c0_i32_1 = arith.constant 0 : i32
    return %arg0, %c0_i32, %c0_i32_0 : i32, i32, i32
  }
}

module attributes {stable_mosaic.version = 11 : i64} {
  func.func @_linear_kernel(%arg0: i32, %arg1: i32, %arg2: i32, %arg3: memref<32x128xbf16, #tpu.memory_space<vmem>>, %arg4: memref<128x128xbf16, #tpu.memory_space<vmem>>, %arg5: memref<1x128xf32, #tpu.memory_space<vmem>>, %arg6: memref<32x128xf32, #tpu.memory_space<vmem>>, %arg7: memref<32x128xf32, #tpu.memory_space<vmem>>) attributes {dimension_semantics = [#tpu.dimension_semantics<parallel>, #tpu.dimension_semantics<parallel>, #tpu.dimension_semantics<arbitrary>], iteration_bounds = array<i64: 1, 1, 1>, scalar_prefetch = 0 : i64, scratch_operands = 1 : i64, tpu.core_type = #tpu.core_type<tc>, window_params = [{transform_indices = @transform_0, window_bounds = array<i64: 32, 128>}, {transform_indices = @transform_1, window_bounds = array<i64: 128, 128>}, {transform_indices = @transform_2, window_bounds = array<i64: 1, 128>}, {transform_indices = @transform_3, window_bounds = array<i64: 32, 128>}]} {
    %c0_i32 = arith.constant 0 : i32
    %0 = arith.cmpi eq, %arg2, %c0_i32 : i32
    %1 = arith.extui %0 : i1 to i32
    %c0_i32_0 = arith.constant 0 : i32
    %2 = arith.cmpi ne, %1, %c0_i32_0 : i32
    scf.if %2 {
      %cst_10 = arith.constant 0.000000e+00 : f32
      %12 = vector.broadcast %cst_10 : f32 to vector<32x128xf32>
      %c0_11 = arith.constant 0 : index
      %c0_12 = arith.constant 0 : index
      %13 = vector.load %arg7[%c0_11, %c0_12] : memref<32x128xf32, #tpu.memory_space<vmem>>, vector<32x128xf32>
      tpu.vector_store %arg7[%c0_11, %c0_12], %12 {strides = array<i32>} : memref<32x128xf32, #tpu.memory_space<vmem>>, vector<32x128xf32>,
    } else {
    }
    %c0 = arith.constant 0 : index
    %c0_1 = arith.constant 0 : index
    %3 = vector.load %arg7[%c0, %c0_1] : memref<32x128xf32, #tpu.memory_space<vmem>>, vector<32x128xf32>
    %c0_2 = arith.constant 0 : index
    %c0_3 = arith.constant 0 : index
    %4 = vector.load %arg3[%c0_2, %c0_3] : memref<32x128xbf16, #tpu.memory_space<vmem>>, vector<32x128xbf16>
    %c0_4 = arith.constant 0 : index
    %c0_5 = arith.constant 0 : index
    %5 = vector.load %arg4[%c0_4, %c0_5] : memref<128x128xbf16, #tpu.memory_space<vmem>>, vector<128x128xbf16>
    %cst = arith.constant dense<0.000000e+00> : vector<32x128xf32>
    %6 = tpu.matmul %4, %5, %cst {dimension_numbers = #tpu.dot_dimension_numbers<[1], [0], [0], [1], [0, 0, 1, 1], [], []>} : vector<32x128xbf16>, vector<128x128xbf16>, vector<32x128xf32> -> vector<32x128xf32>
    %7 = arith.addf %3, %6 : vector<32x128xf32>
    %c0_6 = arith.constant 0 : index
    %c0_7 = arith.constant 0 : index
    %8 = vector.load %arg7[%c0_6, %c0_7] : memref<32x128xf32, #tpu.memory_space<vmem>>, vector<32x128xf32>
    tpu.vector_store %arg7[%c0_6, %c0_7], %7 {strides = array<i32>} : memref<32x128xf32, #tpu.memory_space<vmem>>, vector<32x128xf32>,
    %c0_i32_8 = arith.constant 0 : i32
    %9 = arith.cmpi eq, %arg2, %c0_i32_8 : i32
    %10 = arith.extui %9 : i1 to i32
    %c0_i32_9 = arith.constant 0 : i32
    %11 = arith.cmpi ne, %10, %c0_i32_9 : i32
    scf.if %11 {
      %c0_10 = arith.constant 0 : index
      %c0_11 = arith.constant 0 : index
      %12 = vector.load %arg7[%c0_10, %c0_11] : memref<32x128xf32, #tpu.memory_space<vmem>>, vector<32x128xf32>
      %c0_12 = arith.constant 0 : index
      %c0_13 = arith.constant 0 : index
      %13 = vector.load %arg5[%c0_12, %c0_13] : memref<1x128xf32, #tpu.memory_space<vmem>>, vector<1x128xf32>
      %14 = vector.broadcast %13 : vector<1x128xf32> to vector<32x128xf32>
      %15 = arith.addf %12, %14 : vector<32x128xf32>
      %c0_14 = arith.constant 0 : index
      %c0_15 = arith.constant 0 : index
      %16 = vector.load %arg6[%c0_14, %c0_15] : memref<32x128xf32, #tpu.memory_space<vmem>>, vector<32x128xf32>
      tpu.vector_store %arg6[%c0_14, %c0_15], %15 {strides = array<i32>} : memref<32x128xf32, #tpu.memory_space<vmem>>, vector<32x128xf32>,
    } else {
    }
    return
  }
  func.func @transform_0(%arg0: i32, %arg1: i32, %arg2: i32) -> (i32, i32) {
    %c0_i32 = arith.constant 0 : i32
    return %arg0, %arg2 : i32, i32
  }
  func.func @transform_1(%arg0: i32, %arg1: i32, %arg2: i32) -> (i32, i32) {
    %c0_i32 = arith.constant 0 : i32
    return %arg2, %arg1 : i32, i32
  }
  func.func @transform_2(%arg0: i32, %arg1: i32, %arg2: i32) -> (i32, i32) {
    %c0_i32 = arith.constant 0 : i32
    %c0_i32_0 = arith.constant 0 : i32
    return %c0_i32, %arg1 : i32, i32
  }
  func.func @transform_3(%arg0: i32, %arg1: i32, %arg2: i32) -> (i32, i32) {
    %c0_i32 = arith.constant 0 : i32
    return %arg0, %arg1 : i32, i32
  }
}

module attributes {stable_mosaic.version = 11 : i64} {
  func.func @_linear_combine_kernel(%arg0: i32, %arg1: i32, %arg2: i32, %arg3: memref<32x128xbf16, #tpu.memory_space<vmem>>, %arg4: memref<128x128xbf16, #tpu.memory_space<vmem>>, %arg5: memref<1x128xf32, #tpu.memory_space<vmem>>, %arg6: memref<32x128xf32, #tpu.memory_space<vmem>>, %arg7: memref<32x128xf32, #tpu.memory_space<vmem>>, %arg8: memref<32x128xf32, #tpu.memory_space<vmem>>, %arg9: memref<32x128xf32, #tpu.memory_space<vmem>>) attributes {dimension_semantics = [#tpu.dimension_semantics<parallel>, #tpu.dimension_semantics<parallel>, #tpu.dimension_semantics<arbitrary>], iteration_bounds = array<i64: 1, 1, 1>, scalar_prefetch = 0 : i64, scratch_operands = 1 : i64, tpu.core_type = #tpu.core_type<tc>, window_params = [{transform_indices = @transform_0, window_bounds = array<i64: 32, 128>}, {transform_indices = @transform_1, window_bounds = array<i64: 128, 128>}, {transform_indices = @transform_2, window_bounds = array<i64: 1, 128>}, {transform_indices = @transform_3, window_bounds = array<i64: 32, 128>}, {transform_indices = @transform_4, window_bounds = array<i64: 32, 128>}, {transform_indices = @transform_5, window_bounds = array<i64: 32, 128>}]} {
    %c0_i32 = arith.constant 0 : i32
    %0 = arith.cmpi eq, %arg2, %c0_i32 : i32
    %1 = arith.extui %0 : i1 to i32
    %c0_i32_0 = arith.constant 0 : i32
    %2 = arith.cmpi ne, %1, %c0_i32_0 : i32
    scf.if %2 {
      %cst_10 = arith.constant 0.000000e+00 : f32
      %12 = vector.broadcast %cst_10 : f32 to vector<32x128xf32>
      %c0_11 = arith.constant 0 : index
      %c0_12 = arith.constant 0 : index
      %13 = vector.load %arg9[%c0_11, %c0_12] : memref<32x128xf32, #tpu.memory_space<vmem>>, vector<32x128xf32>
      tpu.vector_store %arg9[%c0_11, %c0_12], %12 {strides = array<i32>} : memref<32x128xf32, #tpu.memory_space<vmem>>, vector<32x128xf32>,
    } else {
    }
    %c0 = arith.constant 0 : index
    %c0_1 = arith.constant 0 : index
    %3 = vector.load %arg9[%c0, %c0_1] : memref<32x128xf32, #tpu.memory_space<vmem>>, vector<32x128xf32>
    %c0_2 = arith.constant 0 : index
    %c0_3 = arith.constant 0 : index
    %4 = vector.load %arg3[%c0_2, %c0_3] : memref<32x128xbf16, #tpu.memory_space<vmem>>, vector<32x128xbf16>
    %c0_4 = arith.constant 0 : index
    %c0_5 = arith.constant 0 : index
    %5 = vector.load %arg4[%c0_4, %c0_5] : memref<128x128xbf16, #tpu.memory_space<vmem>>, vector<128x128xbf16>
    %cst = arith.constant dense<0.000000e+00> : vector<32x128xf32>
    %6 = tpu.matmul %4, %5, %cst {dimension_numbers = #tpu.dot_dimension_numbers<[1], [0], [0], [1], [0, 0, 1, 1], [], []>} : vector<32x128xbf16>, vector<128x128xbf16>, vector<32x128xf32> -> vector<32x128xf32>
    %7 = arith.addf %3, %6 : vector<32x128xf32>
    %c0_6 = arith.constant 0 : index
    %c0_7 = arith.constant 0 : index
    %8 = vector.load %arg9[%c0_6, %c0_7] : memref<32x128xf32, #tpu.memory_space<vmem>>, vector<32x128xf32>
    tpu.vector_store %arg9[%c0_6, %c0_7], %7 {strides = array<i32>} : memref<32x128xf32, #tpu.memory_space<vmem>>, vector<32x128xf32>,
    %c0_i32_8 = arith.constant 0 : i32
    %9 = arith.cmpi eq, %arg2, %c0_i32_8 : i32
    %10 = arith.extui %9 : i1 to i32
    %c0_i32_9 = arith.constant 0 : i32
    %11 = arith.cmpi ne, %10, %c0_i32_9 : i32
    scf.if %11 {
      %c0_10 = arith.constant 0 : index
      %c0_11 = arith.constant 0 : index
      %12 = vector.load %arg9[%c0_10, %c0_11] : memref<32x128xf32, #tpu.memory_space<vmem>>, vector<32x128xf32>
      %c0_12 = arith.constant 0 : index
      %c0_13 = arith.constant 0 : index
      %13 = vector.load %arg5[%c0_12, %c0_13] : memref<1x128xf32, #tpu.memory_space<vmem>>, vector<1x128xf32>
      %14 = vector.broadcast %13 : vector<1x128xf32> to vector<32x128xf32>
      %15 = arith.addf %12, %14 : vector<32x128xf32>
      %c0_14 = arith.constant 0 : index
      %c0_15 = arith.constant 0 : index
      %16 = vector.load %arg7[%c0_14, %c0_15] : memref<32x128xf32, #tpu.memory_space<vmem>>, vector<32x128xf32>
      tpu.vector_store %arg7[%c0_14, %c0_15], %15 {strides = array<i32>} : memref<32x128xf32, #tpu.memory_space<vmem>>, vector<32x128xf32>,
      %c0_16 = arith.constant 0 : index
      %c0_17 = arith.constant 0 : index
      %17 = vector.load %arg6[%c0_16, %c0_17] : memref<32x128xf32, #tpu.memory_space<vmem>>, vector<32x128xf32>
      %18 = arith.addf %15, %17 : vector<32x128xf32>
      %cst_18 = arith.constant 0.707106769 : f32
      %19 = vector.broadcast %cst_18 : f32 to vector<32x128xf32>
      %20 = arith.mulf %18, %19 : vector<32x128xf32>
      %c0_19 = arith.constant 0 : index
      %c0_20 = arith.constant 0 : index
      %21 = vector.load %arg8[%c0_19, %c0_20] : memref<32x128xf32, #tpu.memory_space<vmem>>, vector<32x128xf32>
      tpu.vector_store %arg8[%c0_19, %c0_20], %20 {strides = array<i32>} : memref<32x128xf32, #tpu.memory_space<vmem>>, vector<32x128xf32>,
    } else {
    }
    return
  }
  func.func @transform_0(%arg0: i32, %arg1: i32, %arg2: i32) -> (i32, i32) {
    %c0_i32 = arith.constant 0 : i32
    return %arg0, %arg2 : i32, i32
  }
  func.func @transform_1(%arg0: i32, %arg1: i32, %arg2: i32) -> (i32, i32) {
    %c0_i32 = arith.constant 0 : i32
    return %arg2, %arg1 : i32, i32
  }
  func.func @transform_2(%arg0: i32, %arg1: i32, %arg2: i32) -> (i32, i32) {
    %c0_i32 = arith.constant 0 : i32
    %c0_i32_0 = arith.constant 0 : i32
    return %c0_i32, %arg1 : i32, i32
  }
  func.func @transform_3(%arg0: i32, %arg1: i32, %arg2: i32) -> (i32, i32) {
    %c0_i32 = arith.constant 0 : i32
    return %arg0, %arg1 : i32, i32
  }
  func.func @transform_4(%arg0: i32, %arg1: i32, %arg2: i32) -> (i32, i32) {
    %c0_i32 = arith.constant 0 : i32
    return %arg0, %arg1 : i32, i32
  }
  func.func @transform_5(%arg0: i32, %arg1: i32, %arg2: i32) -> (i32, i32) {
    %c0_i32 = arith.constant 0 : i32
    return %arg0, %arg1 : i32, i32
  }
}

module attributes {stable_mosaic.version = 11 : i64} {
  func.func @_dec_stack_kernel(%arg0: i32, %arg1: i32, %arg2: memref<1x16x128xf32, #tpu.memory_space<vmem>>, %arg3: memref<1x16x128xf32, #tpu.memory_space<vmem>>, %arg4: memref<1x16x128xbf16, #tpu.memory_space<vmem>>, %arg5: memref<1x16x128xbf16, #tpu.memory_space<vmem>>, %arg6: memref<1x384x128xbf16, #tpu.memory_space<vmem>>, %arg7: memref<1x384x128xbf16, #tpu.memory_space<vmem>>, %arg8: memref<1x1x128xf32, #tpu.memory_space<vmem>>, %arg9: memref<1x1x128xf32, #tpu.memory_space<vmem>>, %arg10: memref<128x128xbf16, #tpu.memory_space<vmem>>, %arg11: memref<1x128xf32, #tpu.memory_space<vmem>>, %arg12: memref<128x128xbf16, #tpu.memory_space<vmem>>, %arg13: memref<1x128xf32, #tpu.memory_space<vmem>>, %arg14: memref<1x16x128xf32, #tpu.memory_space<vmem>>, %arg15: memref<1x16x16xf32, #tpu.memory_space<vmem>>, %arg16: memref<1x18x128xf32, #tpu.memory_space<vmem>>) attributes {dimension_semantics = [#tpu.dimension_semantics<parallel>, #tpu.dimension_semantics<arbitrary>], iteration_bounds = array<i64: 2, 2>, scalar_prefetch = 0 : i64, scratch_operands = 1 : i64, tpu.core_type = #tpu.core_type<tc>, window_params = [{transform_indices = @transform_0, window_bounds = array<i64: 1, 16, 128>}, {transform_indices = @transform_1, window_bounds = array<i64: 1, 16, 128>}, {transform_indices = @transform_2, window_bounds = array<i64: 1, 16, 128>}, {transform_indices = @transform_3, window_bounds = array<i64: 1, 16, 128>}, {transform_indices = @transform_4, window_bounds = array<i64: 1, 384, 128>}, {transform_indices = @transform_5, window_bounds = array<i64: 1, 384, 128>}, {transform_indices = @transform_6, window_bounds = array<i64: 1, 1, 128>}, {transform_indices = @transform_7, window_bounds = array<i64: 1, 1, 128>}, {pipeline_mode = #tpu.pipeline_mode<synchronous>, transform_indices = @transform_8, window_bounds = array<i64: 128, 128>}, {pipeline_mode = #tpu.pipeline_mode<synchronous>, transform_indices = @transform_9, window_bounds = array<i64: 1, 128>}, {pipeline_mode = #tpu.pipeline_mode<synchronous>, transform_indices = @transform_10, window_bounds = array<i64: 128, 128>}, {pipeline_mode = #tpu.pipeline_mode<synchronous>, transform_indices = @transform_11, window_bounds = array<i64: 1, 128>}, {transform_indices = @transform_12, window_bounds = array<i64: 1, 16, 128>}, {transform_indices = @transform_13, window_bounds = array<i64: 1, 16, 16>}]} {
    %c0_i32 = arith.constant 0 : i32
    %0 = arith.cmpi eq, %arg1, %c0_i32 : i32
    %1 = arith.extui %0 : i1 to i32
    %c0_i32_0 = arith.constant 0 : i32
    %2 = arith.cmpi ne, %1, %c0_i32_0 : i32
    scf.if %2 {
      %cst_54 = arith.constant 0.000000e+00 : f32
      %79 = vector.broadcast %cst_54 : f32 to vector<1x18x128xf32>
      %c0_55 = arith.constant 0 : index
      %c0_56 = arith.constant 0 : index
      %c0_57 = arith.constant 0 : index
      %80 = vector.load %arg16[%c0_55, %c0_56, %c0_57] : memref<1x18x128xf32, #tpu.memory_space<vmem>>, vector<1x18x128xf32>
      tpu.vector_store %arg16[%c0_55, %c0_56, %c0_57], %79 {strides = array<i32>} : memref<1x18x128xf32, #tpu.memory_space<vmem>>, vector<1x18x128xf32>,
      %c0_58 = arith.constant 0 : index
      %c0_59 = arith.constant 0 : index
      %c0_60 = arith.constant 0 : index
      %81 = vector.load %arg2[%c0_58, %c0_59, %c0_60] : memref<1x16x128xf32, #tpu.memory_space<vmem>>, vector<1x16x128xf32>
      %c0_61 = arith.constant 0 : index
      %c2_62 = arith.constant 2 : index
      %c0_63 = arith.constant 0 : index
      %82 = vector.load %arg16[%c0_61, %c2_62, %c0_63] : memref<1x18x128xf32, #tpu.memory_space<vmem>>, vector<1x16x128xf32>
      tpu.vector_store %arg16[%c0_61, %c2_62, %c0_63], %81 {strides = array<i32>} : memref<1x18x128xf32, #tpu.memory_space<vmem>>, vector<1x16x128xf32>,
    } else {
    }
    %c0 = arith.constant 0 : index
    %c2 = arith.constant 2 : index
    %c0_1 = arith.constant 0 : index
    %3 = vector.load %arg16[%c0, %c2, %c0_1] : memref<1x18x128xf32, #tpu.memory_space<vmem>>, vector<1x16x128xf32>
    %4 = vector.shape_cast %3 : vector<1x16x128xf32> to vector<16x128xf32>
    %c0_2 = arith.constant 0 : index
    %c0_3 = arith.constant 0 : index
    %c0_4 = arith.constant 0 : index
    %5 = vector.load %arg16[%c0_2, %c0_3, %c0_4] : memref<1x18x128xf32, #tpu.memory_space<vmem>>, vector<1x16x128xf32>
    %6 = vector.shape_cast %5 : vector<1x16x128xf32> to vector<16x128xf32>
    %c0_5 = arith.constant 0 : index
    %c1 = arith.constant 1 : index
    %c0_6 = arith.constant 0 : index
    %7 = vector.load %arg16[%c0_5, %c1, %c0_6] : memref<1x18x128xf32, #tpu.memory_space<vmem>>, vector<1x16x128xf32>
    %8 = vector.shape_cast %7 : vector<1x16x128xf32> to vector<16x128xf32>
    %c0_7 = arith.constant 0 : index
    %c2_8 = arith.constant 2 : index
    %c0_9 = arith.constant 0 : index
    %9 = vector.load %arg16[%c0_7, %c2_8, %c0_9] : memref<1x18x128xf32, #tpu.memory_space<vmem>>, vector<1x16x128xf32>
    %10 = vector.shape_cast %9 : vector<1x16x128xf32> to vector<16x128xf32>
    %11 = tpu.concatenate %6, %8, %10 in 1 : vector<16x128xf32>, vector<16x128xf32>, vector<16x128xf32> -> vector<16x384xf32>
    %12 = arith.truncf %11 : vector<16x384xf32> to vector<16x384xbf16>
    %c0_10 = arith.constant 0 : index
    %c0_11 = arith.constant 0 : index
    %c0_12 = arith.constant 0 : index
    %13 = vector.load %arg6[%c0_10, %c0_11, %c0_12] : memref<1x384x128xbf16, #tpu.memory_space<vmem>>, vector<1x384x128xbf16>
    %14 = vector.shape_cast %13 : vector<1x384x128xbf16> to vector<384x128xbf16>
    %cst = arith.constant dense<0.000000e+00> : vector<16x128xf32>
    %15 = tpu.matmul %12, %14, %cst {dimension_numbers = #tpu.dot_dimension_numbers<[1], [0], [0], [1], [0, 0, 1, 1], [], []>} : vector<16x384xbf16>, vector<384x128xbf16>, vector<16x128xf32> -> vector<16x128xf32>
    %c0_13 = arith.constant 0 : index
    %c0_14 = arith.constant 0 : index
    %c0_15 = arith.constant 0 : index
    %16 = vector.load %arg8[%c0_13, %c0_14, %c0_15] : memref<1x1x128xf32, #tpu.memory_space<vmem>>, vector<1x1x128xf32>
    %17 = vector.shape_cast %16 : vector<1x1x128xf32> to vector<1x128xf32>
    %18 = vector.broadcast %17 : vector<1x128xf32> to vector<16x128xf32>
    %19 = arith.addf %15, %18 : vector<16x128xf32>
    %c0_16 = arith.constant 0 : index
    %c0_17 = arith.constant 0 : index
    %c0_18 = arith.constant 0 : index
    %20 = vector.load %arg7[%c0_16, %c0_17, %c0_18] : memref<1x384x128xbf16, #tpu.memory_space<vmem>>, vector<1x384x128xbf16>
    %21 = vector.shape_cast %20 : vector<1x384x128xbf16> to vector<384x128xbf16>
    %cst_19 = arith.constant dense<0.000000e+00> : vector<16x128xf32>
    %22 = tpu.matmul %12, %21, %cst_19 {dimension_numbers = #tpu.dot_dimension_numbers<[1], [0], [0], [1], [0, 0, 1, 1], [], []>} : vector<16x384xbf16>, vector<384x128xbf16>, vector<16x128xf32> -> vector<16x128xf32>
    %c0_20 = arith.constant 0 : index
    %c0_21 = arith.constant 0 : index
    %c0_22 = arith.constant 0 : index
    %23 = vector.load %arg9[%c0_20, %c0_21, %c0_22] : memref<1x1x128xf32, #tpu.memory_space<vmem>>, vector<1x1x128xf32>
    %24 = vector.shape_cast %23 : vector<1x1x128xf32> to vector<1x128xf32>
    %25 = vector.broadcast %24 : vector<1x128xf32> to vector<16x128xf32>
    %26 = arith.addf %22, %25 : vector<16x128xf32>
    %27 = arith.negf %26 : vector<16x128xf32>
    %28 = math.exp %27 : vector<16x128xf32>
    %cst_23 = arith.constant 1.000000e+00 : f32
    %29 = vector.broadcast %cst_23 : f32 to vector<16x128xf32>
    %30 = arith.addf %29, %28 : vector<16x128xf32>
    %31 = arith.divf %29, %30 : vector<16x128xf32>
    %32 = arith.mulf %19, %31 : vector<16x128xf32>
    %c0_24 = arith.constant 0 : index
    %c0_25 = arith.constant 0 : index
    %c0_26 = arith.constant 0 : index
    %33 = vector.load %arg3[%c0_24, %c0_25, %c0_26] : memref<1x16x128xf32, #tpu.memory_space<vmem>>, vector<1x16x128xf32>
    %34 = vector.shape_cast %33 : vector<1x16x128xf32> to vector<16x128xf32>
    %35 = arith.truncf %32 : vector<16x128xf32> to vector<16x128xbf16>
    %c0_27 = arith.constant 0 : index
    %c0_28 = arith.constant 0 : index
    %36 = vector.load %arg10[%c0_27, %c0_28] : memref<128x128xbf16, #tpu.memory_space<vmem>>, vector<128x128xbf16>
    %cst_29 = arith.constant dense<0.000000e+00> : vector<16x128xf32>
    %37 = tpu.matmul %35, %36, %cst_29 {dimension_numbers = #tpu.dot_dimension_numbers<[1], [0], [0], [1], [0, 0, 1, 1], [], []>} : vector<16x128xbf16>, vector<128x128xbf16>, vector<16x128xf32> -> vector<16x128xf32>
    %c0_30 = arith.constant 0 : index
    %c0_31 = arith.constant 0 : index
    %38 = vector.load %arg11[%c0_30, %c0_31] : memref<1x128xf32, #tpu.memory_space<vmem>>, vector<1x128xf32>
    %39 = vector.broadcast %38 : vector<1x128xf32> to vector<16x128xf32>
    %40 = arith.addf %37, %39 : vector<16x128xf32>
    %41 = arith.addf %40, %34 : vector<16x128xf32>
    %cst_32 = arith.constant 0.707106769 : f32
    %42 = vector.broadcast %cst_32 : f32 to vector<16x128xf32>
    %43 = arith.mulf %41, %42 : vector<16x128xf32>
    %44 = arith.truncf %43 : vector<16x128xf32> to vector<16x128xbf16>
    %c0_33 = arith.constant 0 : index
    %c0_34 = arith.constant 0 : index
    %c0_35 = arith.constant 0 : index
    %45 = vector.load %arg4[%c0_33, %c0_34, %c0_35] : memref<1x16x128xbf16, #tpu.memory_space<vmem>>, vector<1x16x128xbf16>
    %46 = vector.shape_cast %45 : vector<1x16x128xbf16> to vector<16x128xbf16>
    "tpu.trace_start"() <{level = 10 : i32, message = "te,se->ts"}> : () -> ()
    %cst_36 = arith.constant dense<0.000000e+00> : vector<16x16xf32>
    %47 = tpu.matmul %44, %46, %cst_36 {dimension_numbers = #tpu.dot_dimension_numbers<[1], [1], [0], [0], [0, 0, 1, 0], [], []>} : vector<16x128xbf16>, vector<16x128xbf16>, vector<16x16xf32> -> vector<16x16xf32>
    "tpu.trace_stop"() : () -> ()
    %cst_37 = arith.constant dense<0xFF800000> : vector<16xf32>
    %48 = vector.multi_reduction <maximumf>, %47, %cst_37 [1] : vector<16x16xf32> to vector<16xf32>
    %49 = vector.shape_cast %48 : vector<16xf32> to vector<16x1xf32>
    %50 = vector.broadcast %49 : vector<16x1xf32> to vector<16x16xf32>
    %51 = arith.subf %47, %50 : vector<16x16xf32>
    %52 = math.exp %51 : vector<16x16xf32>
    %cst_38 = arith.constant dense<0.000000e+00> : vector<16xf32>
    %53 = vector.multi_reduction <add>, %52, %cst_38 [1] : vector<16x16xf32> to vector<16xf32>
    %54 = vector.shape_cast %53 : vector<16xf32> to vector<16x1xf32>
    %55 = tpu.reciprocal %54 {approx = true} : vector<16x1xf32> -> vector<16x1xf32>
    %56 = vector.broadcast %55 : vector<16x1xf32> to vector<16x16xf32>
    %57 = arith.mulf %52, %56 : vector<16x16xf32>
    %58 = arith.truncf %57 : vector<16x16xf32> to vector<16x16xbf16>
    %c0_39 = arith.constant 0 : index
    %c0_40 = arith.constant 0 : index
    %c0_41 = arith.constant 0 : index
    %59 = vector.load %arg5[%c0_39, %c0_40, %c0_41] : memref<1x16x128xbf16, #tpu.memory_space<vmem>>, vector<1x16x128xbf16>
    %60 = vector.shape_cast %59 : vector<1x16x128xbf16> to vector<16x128xbf16>
    %cst_42 = arith.constant dense<0.000000e+00> : vector<16x128xf32>
    %61 = tpu.matmul %58, %60, %cst_42 {dimension_numbers = #tpu.dot_dimension_numbers<[1], [0], [0], [1], [0, 0, 1, 1], [], []>} : vector<16x16xbf16>, vector<16x128xbf16>, vector<16x128xf32> -> vector<16x128xf32>
    %62 = arith.truncf %61 : vector<16x128xf32> to vector<16x128xbf16>
    %c0_43 = arith.constant 0 : index
    %c0_44 = arith.constant 0 : index
    %63 = vector.load %arg12[%c0_43, %c0_44] : memref<128x128xbf16, #tpu.memory_space<vmem>>, vector<128x128xbf16>
    %cst_45 = arith.constant dense<0.000000e+00> : vector<16x128xf32>
    %64 = tpu.matmul %62, %63, %cst_45 {dimension_numbers = #tpu.dot_dimension_numbers<[1], [0], [0], [1], [0, 0, 1, 1], [], []>} : vector<16x128xbf16>, vector<128x128xbf16>, vector<16x128xf32> -> vector<16x128xf32>
    %c0_46 = arith.constant 0 : index
    %c0_47 = arith.constant 0 : index
    %65 = vector.load %arg13[%c0_46, %c0_47] : memref<1x128xf32, #tpu.memory_space<vmem>>, vector<1x128xf32>
    %66 = vector.broadcast %65 : vector<1x128xf32> to vector<16x128xf32>
    %67 = arith.addf %64, %66 : vector<16x128xf32>
    %68 = arith.addf %32, %67 : vector<16x128xf32>
    %cst_48 = arith.constant 0.707106769 : f32
    %69 = vector.broadcast %cst_48 : f32 to vector<16x128xf32>
    %70 = arith.mulf %68, %69 : vector<16x128xf32>
    %71 = arith.addf %70, %4 : vector<16x128xf32>
    %cst_49 = arith.constant 0.707106769 : f32
    %72 = vector.broadcast %cst_49 : f32 to vector<16x128xf32>
    %73 = arith.mulf %71, %72 : vector<16x128xf32>
    %74 = vector.shape_cast %73 : vector<16x128xf32> to vector<1x16x128xf32>
    %c0_50 = arith.constant 0 : index
    %c2_51 = arith.constant 2 : index
    %c0_52 = arith.constant 0 : index
    %75 = vector.load %arg16[%c0_50, %c2_51, %c0_52] : memref<1x18x128xf32, #tpu.memory_space<vmem>>, vector<1x16x128xf32>
    tpu.vector_store %arg16[%c0_50, %c2_51, %c0_52], %74 {strides = array<i32>} : memref<1x18x128xf32, #tpu.memory_space<vmem>>, vector<1x16x128xf32>,
    %c1_i32 = arith.constant 1 : i32
    %76 = arith.cmpi eq, %arg1, %c1_i32 : i32
    %77 = arith.extui %76 : i1 to i32
    %c0_i32_53 = arith.constant 0 : i32
    %78 = arith.cmpi ne, %77, %c0_i32_53 : i32
    scf.if %78 {
      %79 = vector.shape_cast %73 : vector<16x128xf32> to vector<1x16x128xf32>
      %c0_54 = arith.constant 0 : index
      %c0_55 = arith.constant 0 : index
      %c0_56 = arith.constant 0 : index
      %80 = vector.load %arg14[%c0_54, %c0_55, %c0_56] : memref<1x16x128xf32, #tpu.memory_space<vmem>>, vector<1x16x128xf32>
      tpu.vector_store %arg14[%c0_54, %c0_55, %c0_56], %79 {strides = array<i32>} : memref<1x16x128xf32, #tpu.memory_space<vmem>>, vector<1x16x128xf32>,
      %81 = vector.shape_cast %57 : vector<16x16xf32> to vector<1x16x16xf32>
      %c0_57 = arith.constant 0 : index
      %c0_58 = arith.constant 0 : index
      %c0_59 = arith.constant 0 : index
      %82 = vector.load %arg15[%c0_57, %c0_58, %c0_59] : memref<1x16x16xf32, #tpu.memory_space<vmem>>, vector<1x16x16xf32>
      tpu.vector_store %arg15[%c0_57, %c0_58, %c0_59], %81 {strides = array<i32>} : memref<1x16x16xf32, #tpu.memory_space<vmem>>, vector<1x16x16xf32>,
    } else {
    }
    return
  }
  func.func @transform_0(%arg0: i32, %arg1: i32) -> (i32, i32, i32) {
    %c0_i32 = arith.constant 0 : i32
    %c0_i32_0 = arith.constant 0 : i32
    %c0_i32_1 = arith.constant 0 : i32
    return %arg0, %c0_i32, %c0_i32_0 : i32, i32, i32
  }
  func.func @transform_1(%arg0: i32, %arg1: i32) -> (i32, i32, i32) {
    %c0_i32 = arith.constant 0 : i32
    %c0_i32_0 = arith.constant 0 : i32
    %c0_i32_1 = arith.constant 0 : i32
    return %arg0, %c0_i32, %c0_i32_0 : i32, i32, i32
  }
  func.func @transform_2(%arg0: i32, %arg1: i32) -> (i32, i32, i32) {
    %c0_i32 = arith.constant 0 : i32
    %c0_i32_0 = arith.constant 0 : i32
    %c0_i32_1 = arith.constant 0 : i32
    return %arg0, %c0_i32, %c0_i32_0 : i32, i32, i32
  }
  func.func @transform_3(%arg0: i32, %arg1: i32) -> (i32, i32, i32) {
    %c0_i32 = arith.constant 0 : i32
    %c0_i32_0 = arith.constant 0 : i32
    %c0_i32_1 = arith.constant 0 : i32
    return %arg0, %c0_i32, %c0_i32_0 : i32, i32, i32
  }
  func.func @transform_4(%arg0: i32, %arg1: i32) -> (i32, i32, i32) {
    %c0_i32 = arith.constant 0 : i32
    %c0_i32_0 = arith.constant 0 : i32
    %c0_i32_1 = arith.constant 0 : i32
    return %arg1, %c0_i32, %c0_i32_0 : i32, i32, i32
  }
  func.func @transform_5(%arg0: i32, %arg1: i32) -> (i32, i32, i32) {
    %c0_i32 = arith.constant 0 : i32
    %c0_i32_0 = arith.constant 0 : i32
    %c0_i32_1 = arith.constant 0 : i32
    return %arg1, %c0_i32, %c0_i32_0 : i32, i32, i32
  }
  func.func @transform_6(%arg0: i32, %arg1: i32) -> (i32, i32, i32) {
    %c0_i32 = arith.constant 0 : i32
    %c0_i32_0 = arith.constant 0 : i32
    %c0_i32_1 = arith.constant 0 : i32
    return %arg1, %c0_i32, %c0_i32_0 : i32, i32, i32
  }
  func.func @transform_7(%arg0: i32, %arg1: i32) -> (i32, i32, i32) {
    %c0_i32 = arith.constant 0 : i32
    %c0_i32_0 = arith.constant 0 : i32
    %c0_i32_1 = arith.constant 0 : i32
    return %arg1, %c0_i32, %c0_i32_0 : i32, i32, i32
  }
  func.func @transform_8(%arg0: i32, %arg1: i32) -> (i32, i32) {
    %c0_i32 = arith.constant 0 : i32
    %c0_i32_0 = arith.constant 0 : i32
    %c0_i32_1 = arith.constant 0 : i32
    return %c0_i32, %c0_i32_0 : i32, i32
  }
  func.func @transform_9(%arg0: i32, %arg1: i32) -> (i32, i32) {
    %c0_i32 = arith.constant 0 : i32
    %c0_i32_0 = arith.constant 0 : i32
    %c0_i32_1 = arith.constant 0 : i32
    return %c0_i32, %c0_i32_0 : i32, i32
  }
  func.func @transform_10(%arg0: i32, %arg1: i32) -> (i32, i32) {
    %c0_i32 = arith.constant 0 : i32
    %c0_i32_0 = arith.constant 0 : i32
    %c0_i32_1 = arith.constant 0 : i32
    return %c0_i32, %c0_i32_0 : i32, i32
  }
  func.func @transform_11(%arg0: i32, %arg1: i32) -> (i32, i32) {
    %c0_i32 = arith.constant 0 : i32
    %c0_i32_0 = arith.constant 0 : i32
    %c0_i32_1 = arith.constant 0 : i32
    return %c0_i32, %c0_i32_0 : i32, i32
  }
  func.func @transform_12(%arg0: i32, %arg1: i32) -> (i32, i32, i32) {
    %c0_i32 = arith.constant 0 : i32
    %c0_i32_0 = arith.constant 0 : i32
    %c0_i32_1 = arith.constant 0 : i32
    return %arg0, %c0_i32, %c0_i32_0 : i32, i32, i32
  }
  func.func @transform_13(%arg0: i32, %arg1: i32) -> (i32, i32, i32) {
    %c0_i32 = arith.constant 0 : i32
    %c0_i32_0 = arith.constant 0 : i32
    %c0_i32_1 = arith.constant 0 : i32
    return %arg0, %c0_i32, %c0_i32_0 : i32, i32, i32
  }
}

module attributes {stable_mosaic.version = 11 : i64} {
  func.func @_linear_kernel(%arg0: i32, %arg1: i32, %arg2: i32, %arg3: memref<32x128xbf16, #tpu.memory_space<vmem>>, %arg4: memref<128x256xbf16, #tpu.memory_space<vmem>>, %arg5: memref<1x256xf32, #tpu.memory_space<vmem>>, %arg6: memref<32x256xf32, #tpu.memory_space<vmem>>, %arg7: memref<32x256xf32, #tpu.memory_space<vmem>>) attributes {dimension_semantics = [#tpu.dimension_semantics<parallel>, #tpu.dimension_semantics<parallel>, #tpu.dimension_semantics<arbitrary>], iteration_bounds = array<i64: 1, 1, 1>, scalar_prefetch = 0 : i64, scratch_operands = 1 : i64, tpu.core_type = #tpu.core_type<tc>, window_params = [{transform_indices = @transform_0, window_bounds = array<i64: 32, 128>}, {transform_indices = @transform_1, window_bounds = array<i64: 128, 256>}, {transform_indices = @transform_2, window_bounds = array<i64: 1, 256>}, {transform_indices = @transform_3, window_bounds = array<i64: 32, 256>}]} {
    %c0_i32 = arith.constant 0 : i32
    %0 = arith.cmpi eq, %arg2, %c0_i32 : i32
    %1 = arith.extui %0 : i1 to i32
    %c0_i32_0 = arith.constant 0 : i32
    %2 = arith.cmpi ne, %1, %c0_i32_0 : i32
    scf.if %2 {
      %cst_10 = arith.constant 0.000000e+00 : f32
      %12 = vector.broadcast %cst_10 : f32 to vector<32x256xf32>
      %c0_11 = arith.constant 0 : index
      %c0_12 = arith.constant 0 : index
      %13 = vector.load %arg7[%c0_11, %c0_12] : memref<32x256xf32, #tpu.memory_space<vmem>>, vector<32x256xf32>
      tpu.vector_store %arg7[%c0_11, %c0_12], %12 {strides = array<i32>} : memref<32x256xf32, #tpu.memory_space<vmem>>, vector<32x256xf32>,
    } else {
    }
    %c0 = arith.constant 0 : index
    %c0_1 = arith.constant 0 : index
    %3 = vector.load %arg7[%c0, %c0_1] : memref<32x256xf32, #tpu.memory_space<vmem>>, vector<32x256xf32>
    %c0_2 = arith.constant 0 : index
    %c0_3 = arith.constant 0 : index
    %4 = vector.load %arg3[%c0_2, %c0_3] : memref<32x128xbf16, #tpu.memory_space<vmem>>, vector<32x128xbf16>
    %c0_4 = arith.constant 0 : index
    %c0_5 = arith.constant 0 : index
    %5 = vector.load %arg4[%c0_4, %c0_5] : memref<128x256xbf16, #tpu.memory_space<vmem>>, vector<128x256xbf16>
    %cst = arith.constant dense<0.000000e+00> : vector<32x256xf32>
    %6 = tpu.matmul %4, %5, %cst {dimension_numbers = #tpu.dot_dimension_numbers<[1], [0], [0], [1], [0, 0, 1, 1], [], []>} : vector<32x128xbf16>, vector<128x256xbf16>, vector<32x256xf32> -> vector<32x256xf32>
    %7 = arith.addf %3, %6 : vector<32x256xf32>
    %c0_6 = arith.constant 0 : index
    %c0_7 = arith.constant 0 : index
    %8 = vector.load %arg7[%c0_6, %c0_7] : memref<32x256xf32, #tpu.memory_space<vmem>>, vector<32x256xf32>
    tpu.vector_store %arg7[%c0_6, %c0_7], %7 {strides = array<i32>} : memref<32x256xf32, #tpu.memory_space<vmem>>, vector<32x256xf32>,
    %c0_i32_8 = arith.constant 0 : i32
    %9 = arith.cmpi eq, %arg2, %c0_i32_8 : i32
    %10 = arith.extui %9 : i1 to i32
    %c0_i32_9 = arith.constant 0 : i32
    %11 = arith.cmpi ne, %10, %c0_i32_9 : i32
    scf.if %11 {
      %c0_10 = arith.constant 0 : index
      %c0_11 = arith.constant 0 : index
      %12 = vector.load %arg7[%c0_10, %c0_11] : memref<32x256xf32, #tpu.memory_space<vmem>>, vector<32x256xf32>
      %c0_12 = arith.constant 0 : index
      %c0_13 = arith.constant 0 : index
      %13 = vector.load %arg5[%c0_12, %c0_13] : memref<1x256xf32, #tpu.memory_space<vmem>>, vector<1x256xf32>
      %14 = vector.broadcast %13 : vector<1x256xf32> to vector<32x256xf32>
      %15 = arith.addf %12, %14 : vector<32x256xf32>
      %c0_14 = arith.constant 0 : index
      %c0_15 = arith.constant 0 : index
      %16 = vector.load %arg6[%c0_14, %c0_15] : memref<32x256xf32, #tpu.memory_space<vmem>>, vector<32x256xf32>
      tpu.vector_store %arg6[%c0_14, %c0_15], %15 {strides = array<i32>} : memref<32x256xf32, #tpu.memory_space<vmem>>, vector<32x256xf32>,
    } else {
    }
    return
  }
  func.func @transform_0(%arg0: i32, %arg1: i32, %arg2: i32) -> (i32, i32) {
    %c0_i32 = arith.constant 0 : i32
    return %arg0, %arg2 : i32, i32
  }
  func.func @transform_1(%arg0: i32, %arg1: i32, %arg2: i32) -> (i32, i32) {
    %c0_i32 = arith.constant 0 : i32
    return %arg2, %arg1 : i32, i32
  }
  func.func @transform_2(%arg0: i32, %arg1: i32, %arg2: i32) -> (i32, i32) {
    %c0_i32 = arith.constant 0 : i32
    %c0_i32_0 = arith.constant 0 : i32
    return %c0_i32, %arg1 : i32, i32
  }
  func.func @transform_3(%arg0: i32, %arg1: i32, %arg2: i32) -> (i32, i32) {
    %c0_i32 = arith.constant 0 : i32
    return %arg0, %arg1 : i32, i32
  }
}

</mosaic_0001>

<bundles_post_ra>
// kernel: seq2seq_forward.9
= control target key start
LH: loop header
LB: loop body
LE: loop exit
PB: predicated region body
PF: predicated region fallthrough
CT: control target
= control target key end

     0   :  { %s365_s1 = inlined_call_operand.vmem [shape: bf16[128,128], index: 1, kind: input, shape index: {}]   ;;  %s366_s0 = inlined_call_operand.vmem [shape: bf16[32,128], index: 0, kind: input, shape index: {}]   ;;  %s367_s2 = inlined_call_operand.vmem [shape: f32[1,128], index: 2, kind: input, shape index: {}]   ;;  %s368_s3 = inlined_call_operand.vmem [shape: f32[32,128], index: 3, kind: input, shape index: {}]   ;;  %s369_s4 = inlined_call_operand.vmem [shape: f32[32,128], index: 4, kind: output, shape index: {0}]   ;;  %s370_s5 = inlined_call_operand.vmem [shape: f32[32,128], index: 5, kind: output, shape index: {1}]  }
   0x1   :  { %v256_v0 = vld [vmem:[%s365_s1] sm:$0xff]   ;;  %v257_v1 = vld [vmem:[%s365_s1 + $0x8] sm:$0xff]   ;;  %v258_v2 = vld [vmem:[%s365_s1 + $0x10] sm:$0xff]  }
   0x2   :  { %236 = vmatprep.subr.bf16.mxu0 %v256_v0  ;;  %v259_v3 = vld [vmem:[%s365_s1 + $0x18] sm:$0xff]   ;;  %v264_v4 = vld [vmem:[%s366_s0] sm:$0xff]   ;;  %v261_v6 = vld [vmem:[%s365_s1 + $0x28] sm:$0xff]  }
   0x3   :  { %237 = vmatpush3.bf16.msra.mxu0 %v256_v0  ;;  %252 = vmatprep.mubr.bf16.mxu0 %v264_v4  ;;  %v260_v5 = vld [vmem:[%s365_s1 + $0x20] sm:$0xff]   ;;  %v262_v7 = vld [vmem:[%s365_s1 + $0x30] sm:$0xff]   ;;  %v263_v8 = vld [vmem:[%s365_s1 + $0x38] sm:$0xff]  }
   0x4   :  { %238 = vmatprep.subr.bf16.mxu0 %v257_v1  ;;  %v265_v9 = vld [vmem:[%s366_s0 + $0x8] sm:$0xff]   ;;  %v225_v10 = vld [vmem:[%s367_s2] ss:$0 sm:$0xff]  ;;  %v193_v12 = vld [vmem:[%s368_s3 + $0x10] sm:$0xff] }
   0x5   :  { %v191_v15 = vld [vmem:[%s368_s3] sm:$0xff]  ;;  %v194_v18 = vld [vmem:[%s368_s3 + $0x18] sm:$0xff]  ;;  %v192_v22 = vld [vmem:[%s368_s3 + $0x8] sm:$0xff] }
   0x7   :  { %239 = vmatpush3.bf16.msra.mxu0 %v257_v1 }
   0x8   :  { %240 = vmatprep.subr.bf16.mxu0 %v258_v2 }
   0xb   :  { %241 = vmatpush3.bf16.msra.mxu0 %v258_v2 }
   0xc   :  { %242 = vmatprep.subr.bf16.mxu0 %v259_v3 }
   0xf   :  { %243 = vmatpush3.bf16.msra.mxu0 %v259_v3 }
  0x10   :  { %244 = vmatprep.subr.bf16.mxu0 %v260_v5 }
  0x13   :  { %245 = vmatpush3.bf16.msra.mxu0 %v260_v5 }
  0x14   :  { %246 = vmatprep.subr.bf16.mxu0 %v261_v6 }
  0x17   :  { %247 = vmatpush3.bf16.msra.mxu0 %v261_v6 }
  0x18   :  { %248 = vmatprep.subr.bf16.mxu0 %v262_v7 }
  0x1b   :  { %249 = vmatpush3.bf16.msra.mxu0 %v262_v7 }
  0x1c   :  { %250 = vmatprep.subr.bf16.mxu0 %v263_v8 }
  0x1f   :  { %251 = vmatpush3.bf16.msra.mxu0 %v263_v8 }
  0x22   :  { %253 = vmatmul.mubr.bf16.vlgmr.msra.gmra.mrb[0].mxu0 %v265_v9 }
  0xf5   :  { %v254_v11 = vpop.f32.mrb[0].mxu0 }
  0xf6   :  { %v185_v13 = vadd.f32 %v254_v11, %v225_v10  ;;  %v146_v14 = vpop.f32.mrb[1].mxu0 }
  0xf7   :  { %v183_v16 = vadd.f32 %v225_v10, %v146_v14  ;;  %v255_v17 = vpop.f32.mrb[2].mxu0 }
  0xf8   :  { %189 = vst [vmem:[%s369_s4 + $0x10] sm:$0xff] %v185_v13  ;;  %v197_v19 = vadd.f32 %v193_v12, %v185_v13  ;;  %v186_v20 = vadd.f32 %v255_v17, %v225_v10  ;;  %v149_v21 = vpop.f32.mrb[3].mxu0 }
  0xf9   :  { %187 = vst [vmem:[%s369_s4] sm:$0xff] %v183_v16  ;;  %v195_v23 = vadd.f32 %v191_v15, %v183_v16  ;;  %v184_v24 = vadd.f32 %v225_v10, %v149_v21 }
  0xfa   :  { %v201_v25 = vmul.f32 0.70710677, %v197_v19  ;;  %190 = vst [vmem:[%s369_s4 + $0x18] sm:$0xff] %v186_v20  ;;  %v198_v26 = vadd.f32 %v194_v18, %v186_v20 }
  0xfb   :  { %v199_v27 = vmul.f32 0.70710677, %v195_v23  ;;  %188 = vst [vmem:[%s369_s4 + $0x8] sm:$0xff] %v184_v24  ;;  %v196_v28 = vadd.f32 %v192_v22, %v184_v24 }
  0xfc   :  { %205 = vst [vmem:[%s370_s5 + $0x10] sm:$0xff] %v201_v25  ;;  %v202_v29 = vmul.f32 0.70710677, %v198_v26 }
  0xfd   :  { %203 = vst [vmem:[%s370_s5] sm:$0xff] %v199_v27  ;;  %v200_v30 = vmul.f32 0.70710677, %v196_v28 }
  0xfe   :  { %206 = vst [vmem:[%s370_s5 + $0x18] sm:$0xff] %v202_v29 }
  0xff   :  { %204 = vst [vmem:[%s370_s5 + $0x8] sm:$0xff] %v200_v30 }

// kernel: seq2seq_forward.7
= control target key start
LH: loop header
LB: loop body
LE: loop exit
PB: predicated region body
PF: predicated region fallthrough
CT: control target
= control target key end

     0   :  { %s306_s1 = inlined_call_operand.vmem [shape: bf16[128,128], index: 1, kind: input, shape index: {}]   ;;  %s307_s0 = inlined_call_operand.vmem [shape: bf16[32,128], index: 0, kind: input, shape index: {}]   ;;  %s308_s2 = inlined_call_operand.vmem [shape: f32[1,128], index: 2, kind: input, shape index: {}]   ;;  %s309_s3 = inlined_call_operand.vmem [shape: f32[32,128], index: 3, kind: output, shape index: {}]  }
   0x1   :  { %v231_v0 = vld [vmem:[%s306_s1] sm:$0xff]   ;;  %v232_v1 = vld [vmem:[%s306_s1 + $0x8] sm:$0xff]   ;;  %v233_v2 = vld [vmem:[%s306_s1 + $0x10] sm:$0xff]  }
   0x2   :  { %211 = vmatprep.subr.bf16.mxu0 %v231_v0  ;;  %v234_v3 = vld [vmem:[%s306_s1 + $0x18] sm:$0xff]   ;;  %v239_v4 = vld [vmem:[%s307_s0] sm:$0xff]   ;;  %v236_v6 = vld [vmem:[%s306_s1 + $0x28] sm:$0xff]  }
   0x3   :  { %212 = vmatpush3.bf16.msra.mxu0 %v231_v0  ;;  %227 = vmatprep.mubr.bf16.mxu0 %v239_v4  ;;  %v235_v5 = vld [vmem:[%s306_s1 + $0x20] sm:$0xff]   ;;  %v237_v7 = vld [vmem:[%s306_s1 + $0x30] sm:$0xff]   ;;  %v238_v8 = vld [vmem:[%s306_s1 + $0x38] sm:$0xff]  }
   0x4   :  { %213 = vmatprep.subr.bf16.mxu0 %v232_v1  ;;  %v240_v9 = vld [vmem:[%s307_s0 + $0x8] sm:$0xff]   ;;  %v200_v10 = vld [vmem:[%s308_s2] ss:$0 sm:$0xff] }
   0x7   :  { %214 = vmatpush3.bf16.msra.mxu0 %v232_v1 }
   0x8   :  { %215 = vmatprep.subr.bf16.mxu0 %v233_v2 }
   0xb   :  { %216 = vmatpush3.bf16.msra.mxu0 %v233_v2 }
   0xc   :  { %217 = vmatprep.subr.bf16.mxu0 %v234_v3 }
   0xf   :  { %218 = vmatpush3.bf16.msra.mxu0 %v234_v3 }
  0x10   :  { %219 = vmatprep.subr.bf16.mxu0 %v235_v5 }
  0x13   :  { %220 = vmatpush3.bf16.msra.mxu0 %v235_v5 }
  0x14   :  { %221 = vmatprep.subr.bf16.mxu0 %v236_v6 }
  0x17   :  { %222 = vmatpush3.bf16.msra.mxu0 %v236_v6 }
  0x18   :  { %223 = vmatprep.subr.bf16.mxu0 %v237_v7 }
  0x1b   :  { %224 = vmatpush3.bf16.msra.mxu0 %v237_v7 }
  0x1c   :  { %225 = vmatprep.subr.bf16.mxu0 %v238_v8 }
  0x1f   :  { %226 = vmatpush3.bf16.msra.mxu0 %v238_v8 }
  0x22   :  { %228 = vmatmul.mubr.bf16.vlgmr.msra.gmra.mrb[0].mxu0 %v240_v9 }
  0xf5   :  { %v229_v11 = vpop.f32.mrb[0].mxu0 }
  0xf6   :  { %v180_v12 = vadd.f32 %v229_v11, %v200_v10  ;;  %v141_v13 = vpop.f32.mrb[1].mxu0 }
  0xf7   :  { %v178_v14 = vadd.f32 %v200_v10, %v141_v13  ;;  %v230_v15 = vpop.f32.mrb[2].mxu0 }
  0xf8   :  { %184 = vst [vmem:[%s309_s3 + $0x10] sm:$0xff] %v180_v12  ;;  %v181_v16 = vadd.f32 %v230_v15, %v200_v10  ;;  %v144_v17 = vpop.f32.mrb[3].mxu0 }
  0xf9   :  { %182 = vst [vmem:[%s309_s3] sm:$0xff] %v178_v14  ;;  %v179_v18 = vadd.f32 %v200_v10, %v144_v17 }
  0xfa   :  { %185 = vst [vmem:[%s309_s3 + $0x18] sm:$0xff] %v181_v16 }
  0xfb   :  { %183 = vst [vmem:[%s309_s3 + $0x8] sm:$0xff] %v179_v18 }

// kernel: seq2seq_forward.8
= control target key start
LH: loop header
LB: loop body
LE: loop exit
PB: predicated region body
PF: predicated region fallthrough
CT: control target
= control target key end

     0   :  { %s1366_s18 = smov 0   ;;  %s1368_s19 = smov 0   ;;  %s1534_s0 = inlined_call_operand.vmem [shape: f32[2,16,128], index: 0, kind: input, shape index: {}]   ;;  %s1535_s1 = inlined_call_operand.vmem [shape: bf16[2,384,128], index: 1, kind: input, shape index: {}]   ;;  %s1536_s2 = inlined_call_operand.vmem [shape: bf16[2,384,128], index: 2, kind: input, shape index: {}]   ;;  %s1537_s3 = inlined_call_operand.vmem [shape: f32[2,1,128], index: 3, kind: input, shape index: {}]   ;;  %s1538_s4 = inlined_call_operand.vmem [shape: f32[2,1,128], index: 4, kind: input, shape index: {}]   ;;  %s1539_s5 = inlined_call_operand.vmem [shape: f32[2,16,128], index: 5, kind: output, shape index: {}]  }
   0x1   :  { %s1370_s20 = smov 0   ;;  %s1372_s21 = smov 0  }
   0x2   :  { %s1374_s22 = smov 0  }
   0x3 LB: > { %s24_s23 = sadd.s32 1, %s1323_s20  ;;  %s27_s24 = sadd.s32 1, %s1327_s21  ;;  %s1331_s22 = sphi %s1374_s22, %s15_s22   ;;  %s1327_s21 = sphi %s1372_s21, %s1543_s21   ;;  %s1323_s20 = sphi %s1370_s20, %s1542_s20   ;;  %s1319_s19 = sphi %s1368_s19, %s1541_s19   ;;  %s1315_s18 = sphi %s1366_s18, %s1540_s18  }
   0x4   : > { %p25_p0 = scmp.ge.s32.totalorder %s24_s23, 2  ;;  %p1026_p1 = scmp.ge.s32.totalorder %s1331_s22, 1 }
   0x5   : > { %p235_p2 = scmp.lt.s32.totalorder %s1331_s22, 5 }
   0x6   : > { %s1545_s23 = smov (%p25_p0, %s24_s23), 0  ;;  %s1547_s24 = smov (!%p25_p0, %s27_s24), %s1327_s21 }
   0x7   : > { %p236_p3 = pnand %p1026_p1, %p235_p2  ;;  %p29_p4 = scmp.ge.s32.totalorder %s1547_s24, 2 }
   0x8   : > { %p279_p5 = scmp.lt.s32.totalorder (!%p236_p3), %s1319_s19, 1  ;;  %p284_p6 = scmp.lt.s32.totalorder (!%p236_p3), %s1315_s18, 1 }
   0x9   : > { %s1549_s24 = smov (%p29_p4, %s1547_s24), 0  ;;  %239 = sbr.rel (%p236_p3) target bundleno = 342 (0x156), region = 40 }
   0xa   : > { %p1033_p7 = scmp.ne.s32.totalorder (!%p236_p3), %s1315_s18, 0 }
  0x10   : > { %s1551_s19 = smov (!%p279_p5, %s1319_s19), 1  ;;  %309 = sbr.rel (%p1033_p7) target bundleno = 23 (0x17), region = 44 }
  0x11   : > { %s1400_s25 = scalar_select %p284_p6, %s1315_s18, 1 }
  0x12   : > { %s1089_s26 = sshll.u32 %s1551_s19, 4  ;;  %v1333_v2 = vmov (!%p1033_p7), 0.0  }
  0x13   : > { %s283_s29 = scalar_lea.vmem %s1534_s0, %s1089_s26  ;;  %s1193_s30 = smul.u32 192, %s1400_s25  ;;  %310 = vst [vmem:[#allocation2] sm:$0xff] (!%p1033_p7), %v1333_v2  ;;  %311 = vst [vmem:[#allocation2 + $0x8] sm:$0xff] (!%p1033_p7), %v1333_v2 }
  0x14   : > { %s296_s8 = scalar_lea.vmem %s1537_s3, %s1400_s25  ;;  %s299_s11 = scalar_lea.vmem %s1538_s4, %s1400_s25  ;;  %v313_v0 = vld [vmem:[%s283_s29] sm:$0xff] (!%p1033_p7)  ;;  %v314_v1 = vld [vmem:[%s283_s29 + $0x8] sm:$0xff] (!%p1033_p7)  ;;  %312 = vst [vmem:[#allocation2 + $0x10] sm:$0x3] (!%p1033_p7), %v1333_v2 }
  0x15   : > { %s1417_s14 = scalar_lea.vmem %s1535_s1, %s1193_s30  ;;  %s1422_s17 = scalar_lea.vmem %s1536_s2, %s1193_s30  ;;  %315 = vst [vmem:[#allocation2 + $0x1] sm:$0xff] (!%p1033_p7), %v313_v0  ;;  %316 = vst [vmem:[#allocation2 + $0x9] sm:$0xff] (!%p1033_p7), %v314_v1 }
  0x16   : > { %s1427_s28 = scalar_lea.vmem %s1539_s5, %s1089_s26 }
  0x17 PF: > { %v1237_v3 = vld [vmem:[%s1417_s14 + $0x40] sm:$0xff]   ;;  %v1334_v5 = vmov 0.0   ;;  %vm1335_vm0 = vmmov 0   ;;  %v1240_v7 = vld [vmem:[%s1417_s14 + $0x48] sm:$0xff]   ;;  %v1243_v10 = vld [vmem:[%s1417_s14 + $0x50] sm:$0xff]   ;;  %p1086_p8 = scmp.ne.s32.totalorder %s1315_s18, 1 }
  0x18   : > { %v1238_v4 = vld [vmem:[%s1417_s14] sm:$0xff]   ;;  %1153 = vmatprep.subr.bf16.mxu1 %v1334_v5  ;;  %1091 = vmatprep.subr.bf16.mxu0 %v1237_v3  ;;  %v1241_v8 = vld [vmem:[%s1417_s14 + $0x8] sm:$0xff]   ;;  %v1244_v11 = vld [vmem:[%s1417_s14 + $0x10] sm:$0xff]  }
  0x19   : > { %v1239_v6 = vld [vmem:[%s1417_s14 + $0x80] sm:$0xff]   ;;  %1169 = vmatprep.mubr.msk.bf16.mxu1 %vm1335_vm0, %v1334_v5  ;;  %1092 = vmatpush3.bf16.msra.mxu0 %v1238_v4  ;;  %v1242_v9 = vld [vmem:[%s1417_s14 + $0x88] sm:$0xff]   ;;  %v1245_v12 = vld [vmem:[%s1417_s14 + $0x90] sm:$0xff]  }
  0x1a   : > { %1154 = vmatpush3.bf16.msra.mxu1 %v1239_v6  ;;  %1093 = vmatprep.subr.bf16.mxu0 %v1240_v7  ;;  %v1246_v13 = vld [vmem:[%s1417_s14 + $0x58] sm:$0xff]   ;;  %v1249_v16 = vld [vmem:[%s1417_s14 + $0x60] sm:$0xff]   ;;  %v1252_v19 = vld [vmem:[%s1417_s14 + $0x68] sm:$0xff]  }
  0x1b   : > { %1155 = vmatprep.subr.bf16.mxu1 %v1334_v5  ;;  %v1247_v14 = vld [vmem:[%s1417_s14 + $0x18] sm:$0xff]   ;;  %v1250_v17 = vld [vmem:[%s1417_s14 + $0x20] sm:$0xff]   ;;  %v1253_v20 = vld [vmem:[%s1417_s14 + $0x28] sm:$0xff]  }
  0x1c   : > { %v1248_v15 = vld [vmem:[%s1417_s14 + $0x98] sm:$0xff]   ;;  %v1251_v18 = vld [vmem:[%s1417_s14 + $0xa0] sm:$0xff]   ;;  %v1254_v21 = vld [vmem:[%s1417_s14 + $0xa8] sm:$0xff]  }
  0x1d   : > { %1094 = vmatpush3.bf16.msra.mxu0 %v1241_v8  ;;  %v1255_v22 = vld [vmem:[%s1417_s14 + $0x70] sm:$0xff]   ;;  %v1458_v24 = vld [vmem:[#allocation2 + $0x1] sm:$0xff]  ;;  %v1258_v27 = vld [vmem:[%s1417_s14 + $0x78] sm:$0xff]  }
  0x1e   : > { %1156 = vmatpush3.bf16.msra.mxu1 %v1242_v9  ;;  %1095 = vmatprep.subr.bf16.mxu0 %v1243_v10  ;;  %v1256_v23 = vld [vmem:[%s1417_s14 + $0x30] sm:$0xff]   ;;  %v1259_v29 = vld [vmem:[%s1417_s14 + $0x38] sm:$0xff]   ;;  %v319_v31 = vld [vmem:[#allocation2] sm:$0xff] }
  0x1f   : > { %1157 = vmatprep.subr.bf16.mxu1 %v1334_v5  ;;  %v1460_v25 = vld [vmem:[#allocation2 + $0x9] sm:$0xff]  ;;  %v1260_v30 = vld [vmem:[%s1417_s14 + $0xb8] sm:$0xff]   ;;  %v1261_v33 = vld [vmem:[%s1422_s17 + $0x40] sm:$0xff]  }
  0x20   : > { %v1257_v26 = vld [vmem:[%s1417_s14 + $0xb0] sm:$0xff]   ;;  %v324_v28 = vpack.c.bf16 %v1460_v25, %v1458_v24  ;;  %v320_v32 = vld [vmem:[#allocation2 + $0x8] sm:$0xff]  ;;  %v1262_v37 = vld [vmem:[%s1422_s17] sm:$0xff]  }
  0x21   : > { %1096 = vmatpush3.bf16.msra.mxu0 %v1244_v11  ;;  %v321_v34 = vld [vmem:[#allocation2 + $0x2] sm:$0xff]  ;;  %v322_v35 = vld [vmem:[#allocation2 + $0xa] sm:$0xff]  ;;  %v323_v36 = vpack.c.bf16 %v320_v32, %v319_v31  ;;  %v1270_v46 = vld [vmem:[%s1422_s17 + $0x58] sm:$0xff]  }
  0x22   : > { %1158 = vmatpush3.bf16.msra.mxu1 %v1245_v12  ;;  %1097 = vmatprep.subr.bf16.mxu0 %v1246_v13  ;;  %v325_v38 = vpack.c.bf16 %v322_v35, %v321_v34  ;;  %v1263_v39 = vld [vmem:[%s1422_s17 + $0x80] sm:$0xff]   ;;  %v1264_v40 = vld [vmem:[%s1422_s17 + $0x48] sm:$0xff]   ;;  %v1267_v43 = vld [vmem:[%s1422_s17 + $0x50] sm:$0xff]  }
  0x23   : > { %1159 = vmatprep.subr.bf16.mxu1 %v1334_v5  ;;  %557 = vmatprep.mubr.bf16.mxu0 %v324_v28  ;;  %v1265_v41 = vld [vmem:[%s1422_s17 + $0x8] sm:$0xff]   ;;  %v1268_v44 = vld [vmem:[%s1422_s17 + $0x10] sm:$0xff]   ;;  %v1271_v47 = vld [vmem:[%s1422_s17 + $0x18] sm:$0xff]  }
  0x24   : > { %v1266_v42 = vld [vmem:[%s1422_s17 + $0x88] sm:$0xff]   ;;  %v1269_v45 = vld [vmem:[%s1422_s17 + $0x90] sm:$0xff]   ;;  %v1272_v48 = vld [vmem:[%s1422_s17 + $0x98] sm:$0xff]  }
  0x25   : > { %1098 = vmatpush3.bf16.msra.mxu0 %v1247_v14  ;;  %v1273_v49 = vld [vmem:[%s1422_s17 + $0x60] sm:$0xff]   ;;  %v1276_v52 = vld [vmem:[%s1422_s17 + $0x68] sm:$0xff]   ;;  %v1279_v55 = vld [vmem:[%s1422_s17 + $0x70] sm:$0xff]  }
  0x26   : > { %1160 = vmatpush3.bf16.msra.mxu1 %v1248_v15  ;;  %1099 = vmatprep.subr.bf16.mxu0 %v1249_v16  ;;  %v1274_v50 = vld [vmem:[%s1422_s17 + $0x20] sm:$0xff]   ;;  %v1277_v53 = vld [vmem:[%s1422_s17 + $0x28] sm:$0xff]   ;;  %v1280_v56 = vld [vmem:[%s1422_s17 + $0x30] sm:$0xff]  }
  0x27   : > { %1161 = vmatprep.subr.bf16.mxu1 %v1334_v5  ;;  %v1275_v51 = vld [vmem:[%s1422_s17 + $0xa0] sm:$0xff]   ;;  %v1278_v54 = vld [vmem:[%s1422_s17 + $0xa8] sm:$0xff]   ;;  %v1281_v57 = vld [vmem:[%s1422_s17 + $0xb0] sm:$0xff]  }
  0x28   : > { %v1282_v58 = vld [vmem:[%s1422_s17 + $0x78] sm:$0xff]   ;;  %v1034_v63 = vld [vmem:[%s296_s8] ss:$0 sm:$0xff] }
  0x29   : > { %1100 = vmatpush3.bf16.msra.mxu0 %v1250_v17  ;;  %v1283_v59 = vld [vmem:[%s1422_s17 + $0x38] sm:$0xff]   ;;  %v1059_v14 = vld [vmem:[%s299_s11] ss:$0 sm:$0xff] }
  0x2a   : > { %1162 = vmatpush3.bf16.msra.mxu1 %v1251_v18  ;;  %1101 = vmatprep.subr.bf16.mxu0 %v1252_v19  ;;  %v1284_v60 = vld [vmem:[%s1422_s17 + $0xb8] sm:$0xff]  }
  0x2b   : > { %1163 = vmatprep.subr.bf16.mxu1 %v1334_v5 }
  0x2d   : > { %1102 = vmatpush3.bf16.msra.mxu0 %v1253_v20 }
  0x2e   : > { %1164 = vmatpush3.bf16.msra.mxu1 %v1254_v21  ;;  %1103 = vmatprep.subr.bf16.mxu0 %v1255_v22 }
  0x2f   : > { %1165 = vmatprep.subr.bf16.mxu1 %v1334_v5 }
  0x31   : > { %1104 = vmatpush3.bf16.msra.mxu0 %v1256_v23 }
  0x32   : > { %1166 = vmatpush3.bf16.msra.mxu1 %v1257_v26  ;;  %1105 = vmatprep.subr.bf16.mxu0 %v1258_v27 }
  0x33   : > { %1167 = vmatprep.subr.bf16.mxu1 %v1334_v5 }
  0x35   : > { %1106 = vmatpush3.bf16.msra.mxu0 %v1259_v29 }
  0x36   : > { %1168 = vmatpush3.bf16.msra.mxu1 %v1260_v30  ;;  %1122 = vmatprep.subr.bf16.mxu0 %v1261_v33 }
  0x37   : > { %1173 = vmatprep.subr.bf16.mxu1 %v1334_v5 }
  0x38   : > { %558 = vmatmul.mubr.bf16.vlgmr.msra.gmra.mrb[0].mxu0 %v323_v36 }
  0x39   : > { %1123 = vmatpush3.bf16.msra.mxu0 %v1262_v37  ;;  %1170 = vmatmul.mubr.bf16.vlgmr.msra.gmra.mrb[0].mxu1 %v325_v38 }
  0x3a   : > { %1174 = vmatpush3.bf16.msra.mxu1 %v1263_v39  ;;  %1124 = vmatprep.subr.bf16.mxu0 %v1264_v40 }
  0x3b   : > { %1175 = vmatprep.subr.bf16.mxu1 %v1334_v5  ;;  %838 = vmatprep.mubr.bf16.mxu0 %v324_v28 }
  0x3c   : > { %1189 = vmatprep.mubr.msk.bf16.mxu1 %vm1335_vm0, %v1334_v5 }
  0x3d   : > { %1125 = vmatpush3.bf16.msra.mxu0 %v1265_v41 }
  0x3e   : > { %1176 = vmatpush3.bf16.msra.mxu1 %v1266_v42  ;;  %1126 = vmatprep.subr.bf16.mxu0 %v1267_v43 }
  0x3f   : > { %1177 = vmatprep.subr.bf16.mxu1 %v1334_v5 }
  0x41   : > { %1127 = vmatpush3.bf16.msra.mxu0 %v1268_v44 }
  0x42   : > { %1178 = vmatpush3.bf16.msra.mxu1 %v1269_v45  ;;  %1128 = vmatprep.subr.bf16.mxu0 %v1270_v46 }
  0x43   : > { %1179 = vmatprep.subr.bf16.mxu1 %v1334_v5 }
  0x45   : > { %1129 = vmatpush3.bf16.msra.mxu0 %v1271_v47 }
  0x46   : > { %1180 = vmatpush3.bf16.msra.mxu1 %v1272_v48  ;;  %1130 = vmatprep.subr.bf16.mxu0 %v1273_v49 }
  0x47   : > { %1181 = vmatprep.subr.bf16.mxu1 %v1334_v5 }
  0x49   : > { %1131 = vmatpush3.bf16.msra.mxu0 %v1274_v50 }
  0x4a   : > { %1182 = vmatpush3.bf16.msra.mxu1 %v1275_v51  ;;  %1132 = vmatprep.subr.bf16.mxu0 %v1276_v52 }
  0x4b   : > { %1183 = vmatprep.subr.bf16.mxu1 %v1334_v5 }
  0x4d   : > { %1133 = vmatpush3.bf16.msra.mxu0 %v1277_v53 }
  0x4e   : > { %1184 = vmatpush3.bf16.msra.mxu1 %v1278_v54  ;;  %1134 = vmatprep.subr.bf16.mxu0 %v1279_v55 }
  0x4f   : > { %1185 = vmatprep.subr.bf16.mxu1 %v1334_v5 }
  0x51   : > { %1135 = vmatpush3.bf16.msra.mxu0 %v1280_v56 }
  0x52   : > { %1186 = vmatpush3.bf16.msra.mxu1 %v1281_v57  ;;  %1136 = vmatprep.subr.bf16.mxu0 %v1282_v58 }
  0x53   : > { %1187 = vmatprep.subr.bf16.mxu1 %v1334_v5 }
  0x55   : > { %1137 = vmatpush3.bf16.msra.mxu0 %v1283_v59 }
  0x56   : > { %1188 = vmatpush3.bf16.msra.mxu1 %v1284_v60 }
  0x58   : > { %839 = vmatmul.mubr.bf16.vlgmr.msra.gmra.mrb[4].mxu0 %v323_v36 }
  0x59   : > { %1190 = vmatmul.mubr.bf16.vlgmr.msra.gmra.mrb[4].mxu1 %v325_v38 }
 0x10b   : > { %v1107_v61 = vpop.f32.mrb[0].mxu0 }
 0x10c   : > { %v1108_v62 = vpop.f32.mrb[1].mxu0  ;;  %v600_v0 = vpop.f32.mrb[0].mxu1 }
 0x10d   : > { %v1109_v1 = vadd.f32 %v1108_v62, %v1107_v61  ;;  %v1110_v2 = vpop.f32.mrb[2].mxu0  ;;  %v1171_v3 = vpop.f32.mrb[1].mxu1 }
 0x10e   : > { %v1111_v4 = vpop.f32.mrb[3].mxu0  ;;  %v603_v6 = vpop.f32.mrb[2].mxu1 }
 0x10f   : > { %v1112_v7 = vadd.f32 %v1111_v4, %v1110_v2  ;;  %v560_v5 = vadd.f32 %v1109_v1, %v1034_v63  ;;  %v1172_v8 = vpop.f32.mrb[3].mxu1 }
 0x111   : > { %v601_v9 = vadd.f32 %v600_v0, %v560_v5  ;;  %v563_v10 = vadd.f32 %v1112_v7, %v1034_v63 }
 0x113   : > { %v604_v11 = vadd.f32 %v603_v6, %v563_v10 }
 0x12b   : > { %v1138_v12 = vpop.f32.mrb[4].mxu0 }
 0x12c   : > { %v1139_v13 = vpop.f32.mrb[5].mxu0  ;;  %v881_v15 = vpop.f32.mrb[4].mxu1 }
 0x12d   : > { %v1140_v16 = vadd.f32 %v1139_v13, %v1138_v12  ;;  %v1141_v17 = vpop.f32.mrb[6].mxu0  ;;  %v1191_v18 = vpop.f32.mrb[5].mxu1 }
 0x12e   : > { %v1142_v19 = vpop.f32.mrb[7].mxu0  ;;  %v884_v20 = vpop.f32.mrb[6].mxu1 }
 0x12f   : > { %v841_v21 = vadd.f32 %v1140_v16, %v1059_v14  ;;  %v1143_v22 = vadd.f32 %v1142_v19, %v1141_v17  ;;  %v1192_v23 = vpop.f32.mrb[7].mxu1 }
 0x131   : > { %v882_v26 = vadd.f32 %v881_v15, %v841_v21  ;;  %v844_v27 = vadd.f32 %v1143_v22, %v1059_v14 }
 0x133   : > { %v1084_v28 = vmul.f32 -1.442695, %v882_v26  ;;  %v885_v29 = vadd.f32 %v884_v20, %v844_v27 }
 0x135   : > { %1285 = vpow2.f32 %v1084_v28  ;;  %v1085_v30 = vmul.f32 -1.442695, %v885_v29 }
 0x137   : > { %1287 = vpow2.f32 %v1085_v30 }
 0x13f   : > { %v1286_v31 = vpop.eup %1285 }
 0x140   : > { %v894_v32 = vadd.f32 1.0, %v1286_v31 }
 0x141   : > { %v1288_v33 = vpop.eup %1287 }
 0x142   : > { %1289 = vrcp.f32 %v894_v32  ;;  %v895_v34 = vadd.f32 1.0, %v1288_v33 }
 0x144   : > { %1291 = vrcp.f32 %v895_v34 }
 0x14c   : > { %v1290_v35 = vpop.eup %1289 }
 0x14d   : > { %v900_v36 = vmul.f32 %v1290_v35, %v601_v9 }
 0x14e   : > { %v1292_v37 = vpop.eup %1291 }
 0x14f   : > { %v902_v38 = vadd.f32 %v900_v36, %v1458_v24  ;;  %v901_v39 = vmul.f32 %v1292_v37, %v604_v11  ;;  %911 = sbr.rel (%p1086_p8) target bundleno = 342 (0x156), region = 48 }
 0x151   : > { %v904_v40 = vmul.f32 0.70710677, %v902_v38  ;;  %v903_v41 = vadd.f32 %v901_v39, %v1460_v25 }
 0x153   : > { %906 = vst [vmem:[#allocation2 + $0x1] sm:$0xff] %v904_v40  ;;  %v905_v42 = vmul.f32 0.70710677, %v903_v41  ;;  %912 = vst [vmem:[%s1427_s28] sm:$0xff] (!%p1086_p8), %v904_v40 }
 0x155   : > { %907 = vst [vmem:[#allocation2 + $0x9] sm:$0xff] %v905_v42  ;;  %913 = vst [vmem:[%s1427_s28 + $0x8] sm:$0xff] (!%p1086_p8), %v905_v42 }
 0x156 PF: > { %s15_s22 = sadd.s32 1, %s1331_s22   ;;  %s1540_s18 = smov %s1323_s20 }
 0x157   : > { %p12_p9 = scmp.ge.s32.totalorder %s15_s22, 6   ;;  %s1541_s19 = smov %s1327_s21 }
 0x158   : > { %s1542_s20 = smov %s1545_s23  ;;  %s1543_s21 = smov %s1549_s24 }
 0x159   :  { %14 = sbr.rel (!%p12_p9) target bundleno = 3 (0x3), region = 90 }

// kernel: seq2seq_forward.11
= control target key start
LH: loop header
LB: loop body
LE: loop exit
PB: predicated region body
PF: predicated region fallthrough
CT: control target
= control target key end

     0   :  { %s2754_s0 = inlined_call_operand.vmem [shape: f32[2,16,128], index: 0, kind: input, shape index: {}]   ;;  %s2755_s1 = inlined_call_operand.vmem [shape: f32[2,16,128], index: 1, kind: input, shape index: {}]   ;;  %s2756_s2 = inlined_call_operand.vmem [shape: bf16[2,16,128], index: 2, kind: input, shape index: {}]   ;;  %s2757_s3 = inlined_call_operand.vmem [shape: bf16[2,16,128], index: 3, kind: input, shape index: {}]   ;;  %s2758_s4 = inlined_call_operand.vmem [shape: bf16[2,384,128], index: 4, kind: input, shape index: {}]   ;;  %s2759_s5 = inlined_call_operand.vmem [shape: bf16[2,384,128], index: 5, kind: input, shape index: {}]   ;;  %s2760_s6 = inlined_call_operand.vmem [shape: f32[2,1,128], index: 6, kind: input, shape index: {}]   ;;  %s2761_s7 = inlined_call_operand.vmem [shape: f32[2,1,128], index: 7, kind: input, shape index: {}]   ;;  %s2762_s8 = inlined_call_operand.vmem [shape: bf16[128,128], index: 8, kind: input, shape index: {}]   ;;  %s2763_s9 = inlined_call_operand.vmem [shape: f32[1,128], index: 9, kind: input, shape index: {}]   ;;  %s2764_s10 = inlined_call_operand.vmem [shape: bf16[128,128], index: 10, kind: input, shape index: {}]   ;;  %s2765_s11 = inlined_call_operand.vmem [shape: f32[1,128], index: 11, kind: input, shape index: {}]   ;;  %s2766_s12 = inlined_call_operand.vmem [shape: f32[2,16,128], index: 12, kind: output, shape index: {0}]   ;;  %s2767_s13 = inlined_call_operand.hbm [shape: f32[2,16,16], index: 13, kind: output, shape index: {1}]  }
   0x1   :  { %2783 = sst [smem:[#allocation18_spill]] %s2754_s0 }
   0x2   :  { %2784 = sst [smem:[#allocation19_spill]] %s2755_s1 }
   0x3   :  { %2785 = sst [smem:[#allocation20_spill]] %s2756_s2 }
   0x4   :  { %2786 = sst [smem:[#allocation21_spill]] %s2757_s3 }
   0x5   :  { %2787 = sst [smem:[#allocation22_spill]] %s2764_s10 }
   0x6   :  { %2788 = sst [smem:[#allocation23_spill]] %s2765_s11 }
   0x7   :  { %2789 = sst [smem:[#allocation24_spill]] %s2767_s13 }
   0x8   :  { %19 = vsyncpa [#allocation4], 0 }
   0x9   :  { %21 = vsyncpa [#allocation4 + $0x1], 0  ;;  %s2374_s25 = smov 0   ;;  %s2376_s26 = smov 0  }
   0xa   :  { %s2378_s27 = smov 0   ;;  %s2380_s28 = smov 0  }
   0xb   :  { %s2382_s29 = smov 0   ;;  %s2384_s30 = smov 0  }
   0xc   :  { %s2386_s14 = smov 0   ;;  %s2388_s15 = smov 0  }
   0xd LB: > { %2790 = sst [smem:[#allocation6_spill]] %s2268_s25  ;;  %s1763_s16 = sadd.s32 4294967295, %s2296_s15   ;;  %s2296_s15 = sphi %s2388_s15, %s27_s15   ;;  %s2292_s14 = sphi %s2386_s14, %s2826_s14   ;;  %s2288_s30 = sphi %s2384_s30, %s2825_s30   ;;  %s2284_s29 = sphi %s2382_s29, %s2824_s29   ;;  %s2280_s28 = sphi %s2380_s28, %s2823_s28   ;;  %s2276_s27 = sphi %s2378_s27, %s2822_s27   ;;  %s2272_s26 = sphi %s2376_s26, %s2821_s26   ;;  %s2268_s25 = sphi %s2374_s25, %s2820_s25  }
   0xe   : > { %2791 = sst [smem:[#allocation7_spill]] %s2272_s26  ;;  %s1764_s17 = sadd.s32 4294967294, %s2296_s15  }
   0xf   : > { %2792 = sst [smem:[#allocation8_spill]] %s2276_s27  ;;  %s36_s18 = sadd.s32 1, %s2288_s30 }
  0x10   : > { %2793 = sst [smem:[#allocation9_spill]] %s2284_s29  ;;  %p37_p0 = scmp.ge.s32.totalorder %s36_s18, 2 }
  0x11   : > { %2794 = sst [smem:[#allocation10_spill]] %s2288_s30  ;;  %s39_s19 = sadd.s32 1, %s2292_s14 }
  0x12   : > { %2795 = sst [smem:[#allocation11_spill]] %s2292_s14  ;;  %p374_p1 = scmp.ne.s32.totalorder %s2276_s27, %s2272_s26 }
  0x13   : > { %2796 = sst [smem:[#allocation12_spill]] %s2296_s15  ;;  %p375_p2 = scmp.eq.s32.totalorder %s1763_s16, 3 }
  0x14   : > { %s2828_s18 = smov (%p37_p0, %s36_s18), 0  ;;  %s2830_s19 = smov (!%p37_p0, %s39_s19), %s2292_s14 }
  0x15   : > { %2797 = sst [smem:[#allocation13_spill]] %s2828_s18  ;;  %p2423_p3 = por %p375_p2, %p374_p1 }
  0x16   : > { %p380_p4 = scmp.ne.s32.totalorder %s2272_s26, %s2268_s25  ;;  %p41_p5 = scmp.ge.s32.totalorder %s2830_s19, 2 }
  0x17   : > { %s2798_s20 = scalar_select %p2423_p3, 1, 0 }
  0x18   : > { %p381_p6 = scmp.eq.s32.totalorder %s1764_s17, 3  ;;  %p1767_p7 = scmp.ge.s32.totalorder %s2296_s15, 1 }
  0x19   : > { %2799 = sst [smem:[#allocation14_spill]] %s2798_s20  ;;  %p471_p8 = scmp.lt.s32.totalorder %s2296_s15, 5 }
  0x1a   : > { %s2832_s19 = smov (%p41_p5, %s2830_s19), 0  ;;  %p2433_p9 = por %p381_p6, %p380_p4 }
  0x1b   : > { %2800 = sst [smem:[#allocation15_spill]] %s2832_s19  ;;  %p472_p10 = pnand %p1767_p7, %p471_p8 }
  0x1c   : > { %s2801_s21 = scalar_select %p2433_p9, 1, 0 }
  0x1d   : > { %s361_s22 = ssub.s32 %s2292_s14, %s2832_s19  ;;  %s364_s23 = sadd.s32 1, %s2276_s27 }
  0x1e   : > { %2802 = sst [smem:[#allocation16_spill]] %s2801_s21  ;;  %p362_p11 = scmp.eq.s32.totalorder %s361_s22, 0 }
  0x1f   : > { %475 = sbr.rel (%p472_p10) target bundleno = 1591 (0x637), region = 68  ;;  %s2776_s16 = sand.u32 (!%p472_p10), 1, %s2272_s26  }
  0x20   : > { %s2441_s24 = scalar_select %p362_p11, %s2276_s27, %s364_s23  }
  0x21   : > { %p551_p12 = scmp.lt.s32.totalorder (!%p472_p10), %s2284_s29, 1  ;;  %s1768_s17 = sshll.u32 (!%p472_p10), %s2776_s16, 4 }
  0x22   : > { %2803 = sst [smem:[#allocation17_spill]] %s2441_s24  ;;  %p571_p13 = scmp.lt.s32.totalorder (!%p472_p10), %s2280_s28, 1 }
  0x23   : > { %s2804_s0 = sld [smem:[#allocation18_spill]] (!%p472_p10)  ;;  %s2805_s1 = sld [smem:[#allocation19_spill]] (!%p472_p10) }
  0x24   : > { %s2806_s2 = sld [smem:[#allocation20_spill]] (!%p472_p10)  ;;  %s2807_s3 = sld [smem:[#allocation21_spill]] (!%p472_p10) }
  0x25   : > { %s2494_s10 = scalar_lea.vmem (!%p472_p10), [#allocation3], %s1768_s17  ;;  %p1781_p0 = scmp.ne.s32.totalorder (!%p472_p10), %s2280_s28, 0 }
  0x26   : > { %s552_s18 = scalar_select %p551_p12, %s2284_s29, 1 }
  0x27   : > { %s2450_s30 = scalar_select %p571_p13, %s2280_s28, 1 }
  0x28   : > { %s1861_s22 = sshll.u32 %s552_s18, 4  ;;  %s1863_s23 = sshll.u32 %s552_s18, 3  ;;  %v2298_v2 = vmov (!%p1781_p0), 0.0  }
  0x29   : > { %s555_s24 = scalar_lea.vmem %s2804_s0, %s1861_s22  ;;  %s2458_s25 = scalar_lea.vmem %s2805_s1, %s1861_s22  ;;  %597 = vst [vmem:[#allocation2] sm:$0xff] (!%p1781_p0), %v2298_v2  ;;  %598 = vst [vmem:[#allocation2 + $0x8] sm:$0xff] (!%p1781_p0), %v2298_v2 }
  0x2a   : > { %s2463_s13 = scalar_lea.vmem %s2806_s2, %s1863_s23  ;;  %s2468_s29 = scalar_lea.vmem %s2807_s3, %s1863_s23  ;;  %v600_v0 = vld [vmem:[%s555_s24] sm:$0xff] (!%p1781_p0)  ;;  %v601_v1 = vld [vmem:[%s555_s24 + $0x8] sm:$0xff] (!%p1781_p0)  ;;  %599 = vst [vmem:[#allocation2 + $0x10] sm:$0x3] (!%p1781_p0), %v2298_v2 }
  0x2b   : > { %s2043_s18 = smul.u32 192, %s2450_s30  ;;  %s583_s14 = scalar_lea.vmem %s2760_s6, %s2450_s30  ;;  %602 = vst [vmem:[#allocation2 + $0x2] sm:$0xff] (!%p1781_p0), %v600_v0  ;;  %603 = vst [vmem:[#allocation2 + $0xa] sm:$0xff] (!%p1781_p0), %v601_v1 }
  0x2c   : > { %s586_s27 = scalar_lea.vmem %s2761_s7, %s2450_s30  ;;  %s2482_s15 = scalar_lea.vmem %s2766_s12, %s1861_s22 }
  0x2d   : > { %s2487_s26 = scalar_lea.vmem %s2758_s4, %s2043_s18  ;;  %s2492_s3 = scalar_lea.vmem %s2759_s5, %s2043_s18 }
  0x2e   : > { %596 = sbr.rel (%p1781_p0) target bundleno = 53 (0x35), region = 72 }
  0x35 PF: > { %v2120_v3 = vld [vmem:[%s2487_s26 + $0x40] sm:$0xff]   ;;  %v2299_v5 = vmov 0.0   ;;  %vm2300_vm0 = vmmov 0   ;;  %v2123_v7 = vld [vmem:[%s2487_s26 + $0x48] sm:$0xff]   ;;  %v2126_v10 = vld [vmem:[%s2487_s26 + $0x50] sm:$0xff]   ;;  %vm1358_vm1 = vcmask 130048  }
  0x36   : > { %v2121_v4 = vld [vmem:[%s2487_s26] sm:$0xff]   ;;  %1951 = vmatprep.subr.bf16.mxu1 %v2299_v5  ;;  %1867 = vmatprep.subr.bf16.mxu0 %v2120_v3  ;;  %v2124_v8 = vld [vmem:[%s2487_s26 + $0x8] sm:$0xff]   ;;  %v2127_v11 = vld [vmem:[%s2487_s26 + $0x10] sm:$0xff]   ;;  %p1855_p1 = scmp.ne.s32.totalorder %s2280_s28, 1 }
  0x37   : > { %v2122_v6 = vld [vmem:[%s2487_s26 + $0x80] sm:$0xff]   ;;  %1967 = vmatprep.mubr.msk.bf16.mxu1 %vm2300_vm0, %v2299_v5  ;;  %1868 = vmatpush3.bf16.msra.mxu0 %v2121_v4  ;;  %v2125_v9 = vld [vmem:[%s2487_s26 + $0x88] sm:$0xff]   ;;  %v2128_v12 = vld [vmem:[%s2487_s26 + $0x90] sm:$0xff]  }
  0x38   : > { %1952 = vmatpush3.bf16.msra.mxu1 %v2122_v6  ;;  %1869 = vmatprep.subr.bf16.mxu0 %v2123_v7  ;;  %v2129_v13 = vld [vmem:[%s2487_s26 + $0x58] sm:$0xff]   ;;  %v2132_v16 = vld [vmem:[%s2487_s26 + $0x60] sm:$0xff]   ;;  %v2135_v19 = vld [vmem:[%s2487_s26 + $0x68] sm:$0xff]  }
  0x39   : > { %1953 = vmatprep.subr.bf16.mxu1 %v2299_v5  ;;  %v2130_v14 = vld [vmem:[%s2487_s26 + $0x18] sm:$0xff]   ;;  %v2133_v17 = vld [vmem:[%s2487_s26 + $0x20] sm:$0xff]   ;;  %v2136_v20 = vld [vmem:[%s2487_s26 + $0x28] sm:$0xff]  }
  0x3a   : > { %v2131_v15 = vld [vmem:[%s2487_s26 + $0x98] sm:$0xff]   ;;  %v2134_v18 = vld [vmem:[%s2487_s26 + $0xa0] sm:$0xff]   ;;  %v2137_v21 = vld [vmem:[%s2487_s26 + $0xa8] sm:$0xff]  }
  0x3b   : > { %1870 = vmatpush3.bf16.msra.mxu0 %v2124_v8  ;;  %v2138_v22 = vld [vmem:[%s2487_s26 + $0x70] sm:$0xff]   ;;  %v608_v24 = vld [vmem:[#allocation2 + $0x1] sm:$0xff]  ;;  %v2141_v27 = vld [vmem:[%s2487_s26 + $0x78] sm:$0xff]  }
  0x3c   : > { %1954 = vmatpush3.bf16.msra.mxu1 %v2125_v9  ;;  %1871 = vmatprep.subr.bf16.mxu0 %v2126_v10  ;;  %v2139_v23 = vld [vmem:[%s2487_s26 + $0x30] sm:$0xff]   ;;  %v2142_v29 = vld [vmem:[%s2487_s26 + $0x38] sm:$0xff]   ;;  %v606_v31 = vld [vmem:[#allocation2] sm:$0xff] }
  0x3d   : > { %1955 = vmatprep.subr.bf16.mxu1 %v2299_v5  ;;  %v609_v25 = vld [vmem:[#allocation2 + $0x9] sm:$0xff]  ;;  %v2143_v30 = vld [vmem:[%s2487_s26 + $0xb8] sm:$0xff]   ;;  %v2144_v33 = vld [vmem:[%s2492_s3 + $0x40] sm:$0xff]  }
  0x3e   : > { %v2140_v26 = vld [vmem:[%s2487_s26 + $0xb0] sm:$0xff]   ;;  %v611_v28 = vpack.c.bf16 %v609_v25, %v608_v24  ;;  %v607_v32 = vld [vmem:[#allocation2 + $0x8] sm:$0xff]  ;;  %v2145_v37 = vld [vmem:[%s2492_s3] sm:$0xff]  }
  0x3f   : > { %1872 = vmatpush3.bf16.msra.mxu0 %v2127_v11  ;;  %v2531_v34 = vld [vmem:[#allocation2 + $0x2] sm:$0xff]  ;;  %v2533_v35 = vld [vmem:[#allocation2 + $0xa] sm:$0xff]  ;;  %v2536_v36 = vpack.c.bf16 %v607_v32, %v606_v31  ;;  %v2153_v46 = vld [vmem:[%s2492_s3 + $0x58] sm:$0xff]  }
  0x40   : > { %1956 = vmatpush3.bf16.msra.mxu1 %v2128_v12  ;;  %1873 = vmatprep.subr.bf16.mxu0 %v2129_v13  ;;  %v612_v38 = vpack.c.bf16 %v2533_v35, %v2531_v34  ;;  %v2146_v39 = vld [vmem:[%s2492_s3 + $0x80] sm:$0xff]   ;;  %v2147_v40 = vld [vmem:[%s2492_s3 + $0x48] sm:$0xff]   ;;  %v2150_v43 = vld [vmem:[%s2492_s3 + $0x50] sm:$0xff]  }
  0x41   : > { %1957 = vmatprep.subr.bf16.mxu1 %v2299_v5  ;;  %844 = vmatprep.mubr.bf16.mxu0 %v611_v28  ;;  %v2148_v41 = vld [vmem:[%s2492_s3 + $0x8] sm:$0xff]   ;;  %v2151_v44 = vld [vmem:[%s2492_s3 + $0x10] sm:$0xff]   ;;  %v2154_v47 = vld [vmem:[%s2492_s3 + $0x18] sm:$0xff]  }
  0x42   : > { %v2149_v42 = vld [vmem:[%s2492_s3 + $0x88] sm:$0xff]   ;;  %v2152_v45 = vld [vmem:[%s2492_s3 + $0x90] sm:$0xff]   ;;  %v2155_v48 = vld [vmem:[%s2492_s3 + $0x98] sm:$0xff]  }
  0x43   : > { %1874 = vmatpush3.bf16.msra.mxu0 %v2130_v14  ;;  %v2156_v49 = vld [vmem:[%s2492_s3 + $0x60] sm:$0xff]   ;;  %v2159_v52 = vld [vmem:[%s2492_s3 + $0x68] sm:$0xff]   ;;  %v2162_v55 = vld [vmem:[%s2492_s3 + $0x70] sm:$0xff]  }
  0x44   : > { %1958 = vmatpush3.bf16.msra.mxu1 %v2131_v15  ;;  %1875 = vmatprep.subr.bf16.mxu0 %v2132_v16  ;;  %v2157_v50 = vld [vmem:[%s2492_s3 + $0x20] sm:$0xff]   ;;  %v2160_v53 = vld [vmem:[%s2492_s3 + $0x28] sm:$0xff]   ;;  %v2163_v56 = vld [vmem:[%s2492_s3 + $0x30] sm:$0xff]  }
  0x45   : > { %1959 = vmatprep.subr.bf16.mxu1 %v2299_v5  ;;  %v2158_v51 = vld [vmem:[%s2492_s3 + $0xa0] sm:$0xff]   ;;  %v2161_v54 = vld [vmem:[%s2492_s3 + $0xa8] sm:$0xff]   ;;  %v2164_v57 = vld [vmem:[%s2492_s3 + $0xb0] sm:$0xff]  }
  0x46   : > { %v2165_v58 = vld [vmem:[%s2492_s3 + $0x78] sm:$0xff]   ;;  %v2168_v61 = vld [vmem:[%s2762_s8] sm:$0xff]   ;;  %v2169_v62 = vld [vmem:[%s2762_s8 + $0x8] sm:$0xff]  }
  0x47   : > { %1876 = vmatpush3.bf16.msra.mxu0 %v2133_v17  ;;  %v2166_v59 = vld [vmem:[%s2492_s3 + $0x38] sm:$0xff]   ;;  %v2170_v63 = vld [vmem:[%s2762_s8 + $0x10] sm:$0xff]   ;;  %v2172_v1 = vld [vmem:[%s2762_s8 + $0x20] sm:$0xff]  }
  0x48   : > { %1960 = vmatpush3.bf16.msra.mxu1 %v2134_v18  ;;  %1877 = vmatprep.subr.bf16.mxu0 %v2135_v19  ;;  %v2167_v60 = vld [vmem:[%s2492_s3 + $0xb8] sm:$0xff]   ;;  %v2173_v2 = vld [vmem:[%s2762_s8 + $0x28] sm:$0xff]   ;;  %v2174_v3 = vld [vmem:[%s2762_s8 + $0x30] sm:$0xff]  }
  0x49   : > { %1961 = vmatprep.subr.bf16.mxu1 %v2299_v5  ;;  %v2171_v0 = vld [vmem:[%s2762_s8 + $0x18] sm:$0xff]   ;;  %v1782_v8 = vld [vmem:[%s583_s14] ss:$0 sm:$0xff]  ;;  %s2810_s14 = sld [smem:[#allocation23_spill]] }
  0x4a   : > { %v2175_v4 = vld [vmem:[%s2762_s8 + $0x38] sm:$0xff]  }
  0x4b   : > { %1878 = vmatpush3.bf16.msra.mxu0 %v2136_v20 }
  0x4c   : > { %1962 = vmatpush3.bf16.msra.mxu1 %v2137_v21  ;;  %1879 = vmatprep.subr.bf16.mxu0 %v2138_v22 }
  0x4d   : > { %1963 = vmatprep.subr.bf16.mxu1 %v2299_v5 }
  0x4f   : > { %1880 = vmatpush3.bf16.msra.mxu0 %v2139_v23  ;;  %v1807_v23 = vld [vmem:[%s586_s27] ss:$0 sm:$0xff]  ;;  %s2808_s27 = sld [smem:[#allocation22_spill]] }
  0x50   : > { %1964 = vmatpush3.bf16.msra.mxu1 %v2140_v26  ;;  %1881 = vmatprep.subr.bf16.mxu0 %v2141_v27 }
  0x51   : > { %1965 = vmatprep.subr.bf16.mxu1 %v2299_v5 }
  0x53   : > { %1882 = vmatpush3.bf16.msra.mxu0 %v2142_v29 }
  0x54   : > { %1966 = vmatpush3.bf16.msra.mxu1 %v2143_v30  ;;  %1898 = vmatprep.subr.bf16.mxu0 %v2144_v33 }
  0x55   : > { %1971 = vmatprep.subr.bf16.mxu1 %v2299_v5  ;;  %s2809_s24 = smov %s2808_s27 }
  0x56   : > { %845 = vmatmul.mubr.bf16.vlgmr.msra.gmra.mrb[0].mxu0 %v2536_v36 }
  0x57   : > { %1899 = vmatpush3.bf16.msra.mxu0 %v2145_v37  ;;  %1968 = vmatmul.mubr.bf16.vlgmr.msra.gmra.mrb[0].mxu1 %v612_v38 }
  0x58   : > { %1972 = vmatpush3.bf16.msra.mxu1 %v2146_v39  ;;  %1900 = vmatprep.subr.bf16.mxu0 %v2147_v40 }
  0x59   : > { %1973 = vmatprep.subr.bf16.mxu1 %v2299_v5  ;;  %1125 = vmatprep.mubr.bf16.mxu0 %v611_v28 }
  0x5a   : > { %1987 = vmatprep.mubr.msk.bf16.mxu1 %vm2300_vm0, %v2299_v5 }
  0x5b   : > { %1901 = vmatpush3.bf16.msra.mxu0 %v2148_v41 }
  0x5c   : > { %1974 = vmatpush3.bf16.msra.mxu1 %v2149_v42  ;;  %1902 = vmatprep.subr.bf16.mxu0 %v2150_v43 }
  0x5d   : > { %1975 = vmatprep.subr.bf16.mxu1 %v2299_v5 }
  0x5f   : > { %1903 = vmatpush3.bf16.msra.mxu0 %v2151_v44 }
  0x60   : > { %1976 = vmatpush3.bf16.msra.mxu1 %v2152_v45  ;;  %1904 = vmatprep.subr.bf16.mxu0 %v2153_v46 }
  0x61   : > { %1977 = vmatprep.subr.bf16.mxu1 %v2299_v5 }
  0x63   : > { %1905 = vmatpush3.bf16.msra.mxu0 %v2154_v47 }
  0x64   : > { %1978 = vmatpush3.bf16.msra.mxu1 %v2155_v48  ;;  %1906 = vmatprep.subr.bf16.mxu0 %v2156_v49  ;;  %v2176_v49 = vld [vmem:[%s2463_s13] sm:$0xff]  }
  0x65   : > { %1979 = vmatprep.subr.bf16.mxu1 %v2299_v5 }
  0x67   : > { %1907 = vmatpush3.bf16.msra.mxu0 %v2157_v50  ;;  %v1834_v50 = vld [vmem:[%s2763_s9] ss:$0 sm:$0xff] }
  0x68   : > { %1980 = vmatpush3.bf16.msra.mxu1 %v2158_v51  ;;  %1908 = vmatprep.subr.bf16.mxu0 %v2159_v52  ;;  %v1189_v51 = vld [vmem:[%s2458_s25] sm:$0xff] }
  0x69   : > { %1981 = vmatprep.subr.bf16.mxu1 %v2299_v5 }
  0x6b   : > { %1909 = vmatpush3.bf16.msra.mxu0 %v2160_v53 }
  0x6c   : > { %1982 = vmatpush3.bf16.msra.mxu1 %v2161_v54  ;;  %1910 = vmatprep.subr.bf16.mxu0 %v2162_v55  ;;  %v1190_v55 = vld [vmem:[%s2458_s25 + $0x8] sm:$0xff] }
  0x6d   : > { %1983 = vmatprep.subr.bf16.mxu1 %v2299_v5 }
  0x6f   : > { %1911 = vmatpush3.bf16.msra.mxu0 %v2163_v56 }
  0x70   : > { %1984 = vmatpush3.bf16.msra.mxu1 %v2164_v57  ;;  %1912 = vmatprep.subr.bf16.mxu0 %v2165_v58 }
  0x71   : > { %1985 = vmatprep.subr.bf16.mxu1 %v2299_v5 }
  0x73   : > { %1913 = vmatpush3.bf16.msra.mxu0 %v2166_v59 }
  0x74   : > { %1986 = vmatpush3.bf16.msra.mxu1 %v2167_v60  ;;  %1991 = vmatprep.subr.bf16.mxu0 %v2299_v5 }
  0x75   : > { %2017 = vmatprep.subr.bf16.mxu1 %v2299_v5 }
  0x76   : > { %1126 = vmatmul.mubr.bf16.vlgmr.msra.gmra.mrb[4].mxu0 %v2536_v36 }
  0x77   : > { %1988 = vmatmul.mubr.bf16.vlgmr.msra.gmra.mrb[4].mxu1 %v612_v38  ;;  %2007 = vmatprep.mubr.msk.bf16.mxu0 %vm2300_vm0, %v2299_v5 }
  0x78   : > { %2019 = vmatprep.mubr.msk.bf16.mxu1 %vm2300_vm0, %v2299_v5  ;;  %1992 = vmatpush3.bf16.msra.mxu0 %v2168_v61 }
  0x79   : > { %1993 = vmatprep.subr.bf16.mxu0 %v2299_v5 }
  0x7c   : > { %1994 = vmatpush3.bf16.msra.mxu0 %v2169_v62 }
  0x7d   : > { %1995 = vmatprep.subr.bf16.mxu0 %v2299_v5 }
  0x80   : > { %1996 = vmatpush3.bf16.msra.mxu0 %v2170_v63 }
  0x81   : > { %1997 = vmatprep.subr.bf16.mxu0 %v2299_v5 }
  0x84   : > { %1998 = vmatpush3.bf16.msra.mxu0 %v2171_v0 }
  0x85   : > { %1999 = vmatprep.subr.bf16.mxu0 %v2299_v5 }
  0x88   : > { %2000 = vmatpush3.bf16.msra.mxu0 %v2172_v1 }
  0x89   : > { %2001 = vmatprep.subr.bf16.mxu0 %v2299_v5 }
  0x8c   : > { %2002 = vmatpush3.bf16.msra.mxu0 %v2173_v2 }
  0x8d   : > { %2003 = vmatprep.subr.bf16.mxu0 %v2299_v5 }
  0x90   : > { %2004 = vmatpush3.bf16.msra.mxu0 %v2174_v3 }
  0x91   : > { %2005 = vmatprep.subr.bf16.mxu0 %v2299_v5 }
  0x94   : > { %2006 = vmatpush3.bf16.msra.mxu0 %v2175_v4 }
  0x95   : > { %2011 = vmatprep.subr.bf16.mxu0 %v2299_v5 }
 0x129   : > { %v1883_v6 = vpop.f32.mrb[0].mxu0 }
 0x12a   : > { %v1884_v7 = vpop.f32.mrb[1].mxu0  ;;  %v887_v9 = vpop.f32.mrb[0].mxu1 }
 0x12b   : > { %v1885_v10 = vadd.f32 %v1884_v7, %v1883_v6  ;;  %v1886_v11 = vpop.f32.mrb[2].mxu0  ;;  %v1969_v12 = vpop.f32.mrb[1].mxu1 }
 0x12c   : > { %v1887_v13 = vpop.f32.mrb[3].mxu0  ;;  %v890_v14 = vpop.f32.mrb[2].mxu1 }
 0x12d   : > { %v1888_v15 = vadd.f32 %v1887_v13, %v1886_v11  ;;  %v847_v16 = vadd.f32 %v1885_v10, %v1782_v8  ;;  %v1970_v17 = vpop.f32.mrb[3].mxu1 }
 0x12e   : > { %v2177_v17 = vld [vmem:[%s2468_s29] sm:$0xff]  }
 0x12f   : > { %v888_v18 = vadd.f32 %v887_v9, %v847_v16  ;;  %v850_v19 = vadd.f32 %v1888_v15, %v1782_v8  ;;  %2018 = vmatpush3.bf16.msra.mxu1 %v2177_v17 }
 0x130   : > { %2023 = vmatprep.subr.bf16.mxu1 %v2299_v5 }
 0x131   : > { %v891_v20 = vadd.f32 %v890_v14, %v850_v19 }
 0x149   : > { %v1914_v21 = vpop.f32.mrb[4].mxu0 }
 0x14a   : > { %v1915_v22 = vpop.f32.mrb[5].mxu0  ;;  %v1168_v24 = vpop.f32.mrb[4].mxu1 }
 0x14b   : > { %v1916_v25 = vadd.f32 %v1915_v22, %v1914_v21  ;;  %v1917_v26 = vpop.f32.mrb[6].mxu0  ;;  %v1989_v27 = vpop.f32.mrb[5].mxu1 }
 0x14c   : > { %v1918_v28 = vpop.f32.mrb[7].mxu0  ;;  %v1171_v29 = vpop.f32.mrb[6].mxu1  ;;  %v2180_v27 = vld [vmem:[%s2809_s24 + $0x10] sm:$0xff]  }
 0x14d   : > { %v1128_v30 = vadd.f32 %v1916_v25, %v1807_v23  ;;  %v1919_v31 = vadd.f32 %v1918_v28, %v1917_v26  ;;  %v1990_v32 = vpop.f32.mrb[7].mxu1  ;;  %v2179_v26 = vld [vmem:[%s2809_s24 + $0x8] sm:$0xff]   ;;  %v2181_v28 = vld [vmem:[%s2809_s24 + $0x18] sm:$0xff]  }
 0x14e   : > { %v2185_v32 = vld [vmem:[%s2809_s24 + $0x38] sm:$0xff]  }
 0x14f   : > { %v1169_v33 = vadd.f32 %v1168_v24, %v1128_v30  ;;  %v1131_v36 = vadd.f32 %v1919_v31, %v1807_v23  ;;  %v2178_v24 = vld [vmem:[%s2808_s27] sm:$0xff]   ;;  %v2183_v30 = vld [vmem:[%s2809_s24 + $0x28] sm:$0xff]   ;;  %v2184_v31 = vld [vmem:[%s2809_s24 + $0x30] sm:$0xff]  }
 0x151   : > { %v1832_v37 = vmul.f32 -1.442695, %v1169_v33  ;;  %v1172_v38 = vadd.f32 %v1171_v29, %v1131_v36  ;;  %v2182_v29 = vld [vmem:[%s2809_s24 + $0x20] sm:$0xff]  }
 0x153   : > { %2186 = vpow2.f32 %v1832_v37  ;;  %v1833_v39 = vmul.f32 -1.442695, %v1172_v38 }
 0x155   : > { %2188 = vpow2.f32 %v1833_v39 }
 0x15d   : > { %v2187_v40 = vpop.eup %2186 }
 0x15e   : > { %v1181_v41 = vadd.f32 1.0, %v2187_v40  ;;  %v1846_v40 = vld [vmem:[%s2810_s14] ss:$0 sm:$0xff] }
 0x15f   : > { %v2189_v42 = vpop.eup %2188 }
 0x160   : > { %2190 = vrcp.f32 %v1181_v41  ;;  %v1182_v43 = vadd.f32 1.0, %v2189_v42 }
 0x162   : > { %2192 = vrcp.f32 %v1182_v43 }
 0x16a   : > { %v2191_v44 = vpop.eup %2190 }
 0x16b   : > { %v2623_v45 = vmul.f32 %v2191_v44, %v888_v18 }
 0x16c   : > { %v2193_v46 = vpop.eup %2192 }
 0x16d   : > { %v2625_v47 = vmul.f32 %v2193_v46, %v891_v20 }
 0x16f   : > { %v1191_v48 = vpack.c.bf16 %v2625_v47, %v2623_v45 }
 0x171   : > { %2008 = vmatmul.mubr.bf16.vlgmr.msra.gmra.mrb[8].mxu0 %v1191_v48 }
 0x172   : > { %2013 = vmatprep.mubr.msk.bf16.mxu0 %vm2300_vm0, %v2299_v5  ;;  %2012 = vmatpush3.bf16.xpose.msra.mxu0 %v2176_v49 }
 0x244   : > { %v1297_v52 = vpop.f32.mrb[8].mxu0 }
 0x245   : > { %v1298_v53 = vadd.f32 %v1834_v50, %v1297_v52  ;;  %v2009_v54 = vpop.f32.mrb[9].mxu0 }
 0x246   : > { %v1300_v56 = vpop.f32.mrb[10].mxu0 }
 0x247   : > { %v1304_v57 = vadd.f32 %v1298_v53, %v1189_v51  ;;  %v1301_v58 = vadd.f32 %v1834_v50, %v1300_v56  ;;  %v2010_v59 = vpop.f32.mrb[11].mxu0 }
 0x249   : > { %v1305_v60 = vadd.f32 %v1301_v58, %v1190_v55  ;;  %v1306_v61 = vmul.f32 0.70710677, %v1304_v57 }
 0x24b   : > { %v1307_v62 = vmul.f32 0.70710677, %v1305_v60 }
 0x24d   : > { %v1308_v63 = vpack.c.bf16 %v1307_v62, %v1306_v61 }
 0x24f   : > { %2014 = vmatmul.mubr.bf16.vlgmr.msra.gmra.mrb[12].mxu0 %v1308_v63 }
 0x322   : > { %v1351_v0 = vpop.f32.mrb[12].mxu0 }
 0x323   : > { %v2015_v1 = vpop.f32.mrb[13].mxu0  ;;  %v1359_v2 = vsel %vm1358_vm1, %v1351_v0, -inf }
 0x324   : > { %1360 = vmax.xlane.f32.xlu0 %v1359_v2  ;;  %v1354_v3 = vpop.f32.mrb[14].mxu0 }
 0x325   : > { %v2016_v4 = vpop.f32.mrb[15].mxu0  ;;  %v1362_v6 = vsel %vm1358_vm1, %v1354_v3, -inf }
 0x328   : > { %1363 = vmax.xlane.f32.xlu0 %v1362_v6 }
 0x3b1   : > { %v1361_v7 = vpop.xlane.xlu0 %1360 }
 0x3b2   : > { %v1365_v8 = vsub.f32 %v1351_v0, %v1361_v7 }
 0x3b4   : > { %v1367_v9 = vmul.f32 1.442695, %v1365_v8 }
 0x3b5   : > { %v1364_v10 = vpop.xlane.xlu0 %1363 }
 0x3b6   : > { %2194 = vpow2.f32 %v1367_v9  ;;  %v1366_v11 = vsub.f32 %v1354_v3, %v1364_v10 }
 0x3b8   : > { %v1369_v12 = vmul.f32 1.442695, %v1366_v11 }
 0x3ba   : > { %2196 = vpow2.f32 %v1369_v12 }
 0x3c0   : > { %v2195_v13 = vpop.eup %2194 }
 0x3c1   : > { %v1371_v14 = vsel %vm1358_vm1, %v2195_v13, 0.0 }
 0x3c2   : > { %1372 = vadd.xlane.f32.xlu1 %v1371_v14 }
 0x3c4   : > { %v2197_v15 = vpop.eup %2196 }
 0x3c5   : > { %v1374_v16 = vsel %vm1358_vm1, %v2197_v15, 0.0 }
 0x3c6   : > { %1375 = vadd.xlane.f32.xlu1 %v1374_v16 }
 0x44f   : > { %v1373_v18 = vpop.xlane.xlu1 %1372 }
 0x450   : > { %2198 = vrcp.f32 %v1373_v18 }
 0x453   : > { %v1376_v19 = vpop.xlane.xlu1 %1375 }
 0x454   : > { %2200 = vrcp.f32 %v1376_v19 }
 0x45a   : > { %v2199_v20 = vpop.eup %2198 }
 0x45b   : > { %v1379_v22 = vmul.f32 %v2199_v20, %v2195_v13 }
 0x45d   : > { %1563 = vst.msk [vmem:[%s2494_s10] sm:$0xff] (!%p1855_p1), %vm1358_vm1, %v1379_v22 }
 0x45e   : > { %v2201_v21 = vpop.eup %2200 }
 0x45f   : > { %v1380_v23 = vmul.f32 %v2201_v21, %v2197_v15 }
 0x461   : > { %v1381_v25 = vpack.c.bf16 %v1380_v23, %v1379_v22  ;;  %1564 = vst.msk [vmem:[%s2494_s10 + $0x8] sm:$0xff] (!%p1855_p1), %vm1358_vm1, %v1380_v23 }
 0x463   : > { %2020 = vmatmul.mubr.msk.bf16.vlgmr.msra.gmra.mrb[8].mxu1 %vm1358_vm1, %v1381_v25 }
 0x464   : > { %2024 = vmatpush3.bf16.msra.mxu1 %v2178_v24  ;;  %2039 = vmatprep.mubr.msk.bf16.mxu1 %vm2300_vm0, %v2299_v5 }
 0x465   : > { %2025 = vmatprep.subr.bf16.mxu1 %v2299_v5 }
 0x468   : > { %2026 = vmatpush3.bf16.msra.mxu1 %v2179_v26 }
 0x469   : > { %2027 = vmatprep.subr.bf16.mxu1 %v2299_v5 }
 0x46c   : > { %2028 = vmatpush3.bf16.msra.mxu1 %v2180_v27 }
 0x46d   : > { %2029 = vmatprep.subr.bf16.mxu1 %v2299_v5 }
 0x470   : > { %2030 = vmatpush3.bf16.msra.mxu1 %v2181_v28 }
 0x471   : > { %2031 = vmatprep.subr.bf16.mxu1 %v2299_v5 }
 0x474   : > { %2032 = vmatpush3.bf16.msra.mxu1 %v2182_v29 }
 0x475   : > { %2033 = vmatprep.subr.bf16.mxu1 %v2299_v5 }
 0x478   : > { %2034 = vmatpush3.bf16.msra.mxu1 %v2183_v30 }
 0x479   : > { %2035 = vmatprep.subr.bf16.mxu1 %v2299_v5 }
 0x47c   : > { %2036 = vmatpush3.bf16.msra.mxu1 %v2184_v31 }
 0x47d   : > { %2037 = vmatprep.subr.bf16.mxu1 %v2299_v5 }
 0x480   : > { %2038 = vmatpush3.bf16.msra.mxu1 %v2185_v32 }
 0x536   : > { %v1427_v33 = vpop.f32.mrb[8].mxu1 }
 0x537   : > { %v2021_v36 = vpop.f32.mrb[9].mxu1 }
 0x538   : > { %v1430_v37 = vpop.f32.mrb[10].mxu1 }
 0x539   : > { %v1434_v38 = vpack.c.bf16 %v1430_v37, %v1427_v33  ;;  %v2022_v39 = vpop.f32.mrb[11].mxu1 }
 0x53b   : > { %2040 = vmatmul.mubr.bf16.vlgmr.msra.gmra.mrb[12].mxu1 %v1434_v38 }
 0x60e   : > { %v1540_v41 = vpop.f32.mrb[12].mxu1 }
 0x60f   : > { %v1541_v42 = vadd.f32 %v1846_v40, %v1540_v41  ;;  %v2041_v43 = vpop.f32.mrb[13].mxu1 }
 0x610   : > { %v1543_v44 = vpop.f32.mrb[14].mxu1 }
 0x611   : > { %v1547_v5 = vadd.f32 %v1541_v42, %v2623_v45  ;;  %v1544_v46 = vadd.f32 %v1846_v40, %v1543_v44  ;;  %v2042_v48 = vpop.f32.mrb[15].mxu1 }
 0x613   : > { %v1549_v49 = vmul.f32 0.70710677, %v1547_v5  ;;  %v1548_v50 = vadd.f32 %v1544_v46, %v2625_v47 }
 0x615   : > { %v1551_v51 = vadd.f32 %v1549_v49, %v2531_v34  ;;  %v1550_v52 = vmul.f32 0.70710677, %v1548_v50  ;;  %1560 = sbr.rel (%p1855_p1) target bundleno = 1564 (0x61c), region = 76 }
 0x617   : > { %v1553_v53 = vmul.f32 0.70710677, %v1551_v51  ;;  %v1552_v54 = vadd.f32 %v1550_v52, %v2533_v35 }
 0x619   : > { %1555 = vst [vmem:[#allocation2 + $0x2] sm:$0xff] %v1553_v53  ;;  %v1554_v55 = vmul.f32 0.70710677, %v1552_v54  ;;  %1561 = vst [vmem:[%s2482_s15] sm:$0xff] (!%p1855_p1), %v1553_v53 }
 0x61b   : > { %1556 = vst [vmem:[#allocation2 + $0xa] sm:$0xff] %v1554_v55  ;;  %1562 = vst [vmem:[%s2482_s15 + $0x8] sm:$0xff] (!%p1855_p1), %v1554_v55 }
 0x61c PF: > { %s2811_s13 = sld [smem:[#allocation9_spill]]  ;;  %s2814_s28 = sld [smem:[#allocation24_spill]] }
 0x61d   : > { %s2812_s25 = sld [smem:[#allocation7_spill]]  ;;  %s1587_s21 = sshll.u32 %s2494_s10, 4  ;;  %s2698_s21 = int_to_ptr.vmem [resolvable:$true] %s1587_s21 }
 0x61e   : > { %s2202_s26 = scalar_lea.vmem %s2698_s21, 256  ;;  %s2301_s20 = smov [#allocation3]  }
 0x61f   : > { %p2203_p2 = scmp.ne.s32.totalorder %s2698_s21, %s2202_s26  ;;  %s2206_s23 = sshll.u32 %s2301_s20, 4  ;;  %s2207_s23 = int_to_ptr.vmem [resolvable:$false] %s2206_s23 }
 0x620   : > { %s2208_s0 = scalar_lea.vmem %s2207_s23, 512  ;;  %p2209_p6 = scmp.lt.s32.totalorder %s2698_s21, %s2207_s23 }
 0x621   : > { %p2204_p4 = pnand %p2203_p2, %p2423_p3  ;;  %p2210_p7 = scmp.lt.s32.totalorder %s2208_s0, %s2202_s26 }
 0x622   : > { %s1866_s29 = sshll.u32 %s2811_s13, 8  ;;  %s2815_s18 = smov %s2814_s28 }
 0x623   : > { %s2695_s19 = scalar_lea.hbm %s2814_s28, %s1866_s29  ;;  %s2816_s16 = sand.u32 1, %s2812_s25  }
 0x624   : > { %s2702_s15 = scalar_lea.sflag [#allocation4], %s2816_s16  ;;  %p2205_p5 = pneg %p2204_p4 }
 0x625   : > { %p2211_p8 = por %p2210_p7, %p2209_p6 }
 0x627   : > { %p2212_p10 = pnand %p2211_p8, %p2205_p5 }
 0x629   : > { %2215 = shalt.err (!%p2212_p10)
}
 0x62a   : > { %s2216_s10 = scalar_lea.hbm %s2695_s19, 256  ;;  %s2220_s3 = scalar_lea.hbm %s2815_s18, 512 }
 0x62b   : > { %p2217_p11 = scmp.ne.s32.totalorder %s2695_s19, %s2216_s10  ;;  %p2221_p0 = scmp.lt.u32.totalorder %s2695_s19, %s2815_s18 }
 0x62c   : > { %p2222_p1 = scmp.lt.u32.totalorder %s2220_s3, %s2216_s10  ;;  %p2224_p4 = scmp.lt.u32.totalorder %s2216_s10, %s2695_s19 }
 0x62d   : > { %p2218_p12 = pnand %p2217_p11, %p2423_p3 }
 0x62e   : > { %p2223_p2 = por %p2222_p1, %p2221_p0 }
 0x62f   : > { %p2219_p13 = pneg %p2218_p12 }
 0x630   : > { %p2225_p5 = por %p2224_p4, %p2223_p2 }
 0x632   : > { %p2226_p6 = pnand %p2225_p5, %p2219_p13 }
 0x634   : > { %2229 = shalt.err (!%p2226_p6)
}
 0x635   : > { %s2302_s14 = smov 128   ;;  %s2303_s13 = smov 8  }
 0x636   : > { %2044 = dma.vmem_to_hbm [thread:$0]  (%p2423_p3), %s2698_s21, 256, %s2695_s19, %s2702_s15, %s2302_s14, %s2302_s14, %s2303_s13  }
 0x637 PF: > { %s2817_s25 = sld [smem:[#allocation12_spill]]  ;;  %s2818_s29 = sld [smem:[#allocation6_spill]] }
 0x63d   : > { %p2050_p7 = scmp.ge.s32.totalorder %s2817_s25, 2  ;;  %s1610_s22 = sand.u32 1, %s2818_s29  }
 0x63e   : > { %s1611_s28 = scalar_lea.sflag [#allocation4], %s1610_s22 }
 0x63f   : > { %p2047_p8 = pnand %p2050_p7, %p2433_p9 }
 0x641   : > { %2263 = dma.done.wait (!%p2047_p8), %s1611_s28, 256  }
 0x642   : > { %2265 = vsyncadd (!%p2047_p8), %s1611_s28, 4294967040  ;;  %s27_s15 = sadd.s32 1, %s2817_s25   ;;  %s2820_s25 = sld [smem:[#allocation7_spill]] }
 0x643   : > { %p24_p10 = scmp.ge.s32.totalorder %s27_s15, 6   ;;  %s2821_s26 = sld [smem:[#allocation8_spill]] }
 0x644   : > { %s2822_s27 = sld [smem:[#allocation17_spill]]  ;;  %s2823_s28 = sld [smem:[#allocation10_spill]] }
 0x645   : > { %s2824_s29 = sld [smem:[#allocation11_spill]]  ;;  %s2825_s30 = sld [smem:[#allocation13_spill]] }
 0x646   : > { %s2826_s14 = sld [smem:[#allocation15_spill]]  ;;  %26 = sbr.rel (!%p24_p10) target bundleno = 13 (0xd), region = 144 }
 0x64d   :  { %1616 = vsyncpa [#allocation4], 1 }
 0x64e   :  { %1618 = vsyncpa [#allocation4 + $0x1], 1 }

// kernel: seq2seq_forward.13
= control target key start
LH: loop header
LB: loop body
LE: loop exit
PB: predicated region body
PF: predicated region fallthrough
CT: control target
= control target key end

     0   :  { %v360_v2 = vmov 0   ;;  %s453_s0 = inlined_call_operand.vmem [shape: bf16[32,128], index: 0, kind: input, shape index: {}]   ;;  %s454_s1 = inlined_call_operand.vmem [shape: bf16[128,256], index: 1, kind: input, shape index: {}]   ;;  %s455_s2 = inlined_call_operand.vmem [shape: f32[1,256], index: 2, kind: input, shape index: {}]   ;;  %s456_s3 = inlined_call_operand.hbm [shape: f32[32,256], index: 3, kind: output, shape index: {}]  }
   0x1   :  { %v310_v0 = vld [vmem:[%s454_s1 + $0x4] ss:$8 sps:$4 sm:$0xff]   ;;  %v312_v1 = vld [vmem:[%s454_s1] ss:$8 sps:$4 sm:$0xff]   ;;  %180 = vmatprep.mubr.bf16.mxu0 %v360_v2  ;;  %190 = vmatprep.mubr.bf16.mxu1 %v360_v2  ;;  %v313_v3 = vld [vmem:[%s454_s1 + $0x14] ss:$8 sps:$4 sm:$0xff]  }
   0x2   :  { %148 = vmatprep.subr.bf16.mxu0 %v310_v0  ;;  %290 = vmatprep.subr.bf16.mxu1 %v310_v0  ;;  %v315_v4 = vld [vmem:[%s454_s1 + $0x10] ss:$8 sps:$4 sm:$0xff]   ;;  %v316_v5 = vld [vmem:[%s454_s1 + $0x24] ss:$8 sps:$4 sm:$0xff]   ;;  %v318_v6 = vld [vmem:[%s454_s1 + $0x20] ss:$8 sps:$4 sm:$0xff]  }
   0x3   :  { %149 = vmatpush1.bf16.msra.mxu0 %v312_v1  ;;  %298 = vmatpush1.bf16.msra.mxu1 %v312_v1  ;;  %v319_v7 = vld [vmem:[%s454_s1 + $0x34] ss:$8 sps:$4 sm:$0xff]   ;;  %v321_v8 = vld [vmem:[%s454_s1 + $0x30] ss:$8 sps:$4 sm:$0xff]   ;;  %v322_v9 = vld [vmem:[%s454_s1 + $0x44] ss:$8 sps:$4 sm:$0xff]  }
   0x4   :  { %150 = vmatprep.subr.bf16.mxu0 %v313_v3  ;;  %291 = vmatprep.subr.bf16.mxu1 %v313_v3 }
   0x7   :  { %151 = vmatpush1.bf16.msra.mxu0 %v315_v4  ;;  %299 = vmatpush1.bf16.msra.mxu1 %v315_v4 }
   0x8   :  { %152 = vmatprep.subr.bf16.mxu0 %v316_v5  ;;  %292 = vmatprep.subr.bf16.mxu1 %v316_v5 }
   0xb   :  { %153 = vmatpush1.bf16.msra.mxu0 %v318_v6  ;;  %300 = vmatpush1.bf16.msra.mxu1 %v318_v6 }
   0xc   :  { %154 = vmatprep.subr.bf16.mxu0 %v319_v7  ;;  %293 = vmatprep.subr.bf16.mxu1 %v319_v7 }
   0xd   :  { %8 = vsyncpa [#allocation4], 0  ;;  %v324_v10 = vld [vmem:[%s454_s1 + $0x40] ss:$8 sps:$4 sm:$0xff]   ;;  %v325_v11 = vld [vmem:[%s454_s1 + $0x54] ss:$8 sps:$4 sm:$0xff]   ;;  %v230_v19 = vlaneseq }
   0xe   :  { %v327_v12 = vld [vmem:[%s454_s1 + $0x50] ss:$8 sps:$4 sm:$0xff]   ;;  %v328_v13 = vld [vmem:[%s454_s1 + $0x64] ss:$8 sps:$4 sm:$0xff]   ;;  %v330_v14 = vld [vmem:[%s454_s1 + $0x60] ss:$8 sps:$4 sm:$0xff]  }
   0xf   :  { %155 = vmatpush1.bf16.msra.mxu0 %v321_v8  ;;  %301 = vmatpush1.bf16.msra.mxu1 %v321_v8  ;;  %v331_v15 = vld [vmem:[%s454_s1 + $0x74] ss:$8 sps:$4 sm:$0xff]   ;;  %v333_v16 = vld [vmem:[%s454_s1 + $0x70] ss:$8 sps:$4 sm:$0xff]   ;;  %v334_v17 = vld [vmem:[%s453_s0] sm:$0xff]   ;;  %v231_v20 = vshrl.u32 %v230_v19, 7 }
  0x10   :  { %156 = vmatprep.subr.bf16.mxu0 %v322_v9  ;;  %294 = vmatprep.subr.bf16.mxu1 %v322_v9  ;;  %v335_v18 = vld [vmem:[%s453_s0 + $0x8] sm:$0xff]   ;;  %v228_v22 = vld [vmem:[%s455_s2] sm:$0x3]  ;;  %s361_s1 = smov [#allocation3]  }
  0x11   :  { %v232_v21 = vsub.s32 0, %v231_v20  ;;  %v236_v23 = vsub.s32 1, %v231_v20  ;;  %s261_s23 = sshll.u32 %s361_s1, 4  ;;  %s262_s23 = int_to_ptr.vmem [resolvable:$true] %s261_s23 }
  0x12   :  { %s336_s0 = scalar_lea.vmem %s262_s23, 1024  ;;  %p341_p1 = scmp.lt.s32.totalorder %s262_s23, %s262_s23 }
  0x13   :  { %157 = vmatpush1.bf16.msra.mxu0 %v324_v10  ;;  %302 = vmatpush1.bf16.msra.mxu1 %v324_v10  ;;  %v233_v24 = vrot.slane %v228_v22, %v232_v21  ;;  %v237_v25 = vrot.slane %v228_v22, %v236_v23  ;;  %p337_p0 = scmp.ne.s32.totalorder %s262_s23, %s336_s0  ;;  %p342_p2 = scmp.lt.s32.totalorder %s336_s0, %s336_s0 }
  0x14   :  { %158 = vmatprep.subr.bf16.mxu0 %v325_v11  ;;  %295 = vmatprep.subr.bf16.mxu1 %v325_v11 }
  0x15   :  { %p343_p3 = por %p342_p2, %p341_p1 }
  0x17   :  { %159 = vmatpush1.bf16.msra.mxu0 %v327_v12  ;;  %303 = vmatpush1.bf16.msra.mxu1 %v327_v12  ;;  %p344_p4 = pnand %p343_p3, %p337_p0 }
  0x18   :  { %160 = vmatprep.subr.bf16.mxu0 %v328_v13  ;;  %296 = vmatprep.subr.bf16.mxu1 %v328_v13 }
  0x1b   :  { %161 = vmatpush1.bf16.msra.mxu0 %v330_v14  ;;  %304 = vmatpush1.bf16.msra.mxu1 %v330_v14 }
  0x1c   :  { %162 = vmatprep.subr.bf16.mxu0 %v331_v15  ;;  %297 = vmatprep.subr.bf16.mxu1 %v331_v15 }
  0x1f   :  { %163 = vmatpush1.bf16.msra.mxu0 %v333_v16  ;;  %305 = vmatpush1.bf16.msra.mxu1 %v333_v16 }
  0x22   :  { %181 = vmatmul.mubr.bf16.vlgmr.msra.gmra.mrb[0].mxu0 %v334_v17  ;;  %191 = vmatmul.mubr.bf16.vlgmr.msra.gmra.mrb[0].mxu1 %v335_v18 }
  0xf5   :  { %v182_v26 = vpop.f32.mrb[0].mxu0  ;;  %v192_v27 = vpop.f32.mrb[0].mxu1 }
  0xf6   :  { %v240_v28 = vadd.f32 %v233_v24, %v182_v26  ;;  %v244_v29 = vadd.f32 %v233_v24, %v192_v27  ;;  %v184_v30 = vpop.f32.mrb[1].mxu0  ;;  %v194_v31 = vpop.f32.mrb[1].mxu1 }
  0xf7   :  { %v241_v32 = vadd.f32 %v237_v25, %v184_v30  ;;  %v245_v33 = vadd.f32 %v237_v25, %v194_v31  ;;  %v186_v34 = vpop.f32.mrb[2].mxu0  ;;  %v196_v35 = vpop.f32.mrb[2].mxu1 }
  0xf8   :  { %248 = vst [vmem:[#allocation3] sm:$0xff] %v240_v28  ;;  %252 = vst [vmem:[#allocation3 + $0x20] sm:$0xff] %v244_v29  ;;  %v242_v36 = vadd.f32 %v233_v24, %v186_v34  ;;  %v246_v37 = vadd.f32 %v233_v24, %v196_v35  ;;  %v188_v38 = vpop.f32.mrb[3].mxu0  ;;  %v198_v39 = vpop.f32.mrb[3].mxu1 }
  0xf9   :  { %249 = vst [vmem:[#allocation3 + $0x8] sm:$0xff] %v241_v32  ;;  %253 = vst [vmem:[#allocation3 + $0x28] sm:$0xff] %v245_v33  ;;  %v243_v40 = vadd.f32 %v237_v25, %v188_v38  ;;  %v247_v41 = vadd.f32 %v237_v25, %v198_v39 }
  0xfa   :  { %250 = vst [vmem:[#allocation3 + $0x10] sm:$0xff] %v242_v36  ;;  %254 = vst [vmem:[#allocation3 + $0x30] sm:$0xff] %v246_v37 }
  0xfb   :  { %251 = vst [vmem:[#allocation3 + $0x18] sm:$0xff] %v243_v40  ;;  %255 = vst [vmem:[#allocation3 + $0x38] sm:$0xff] %v247_v41 }
  0xfc   :  { %347 = shalt.err (!%p344_p4)
}
  0xfd   :  { %s348_s25 = scalar_lea.hbm %s456_s3, 1024 }
  0xfe   :  { %p349_p5 = scmp.ne.s32.totalorder %s456_s3, %s348_s25  ;;  %p352_p6 = scmp.lt.u32.totalorder %s348_s25, %s456_s3 }
 0x100   :  { %p354_p7 = pnand %p352_p6, %p349_p5 }
 0x102   :  { %357 = shalt.err (!%p354_p7)
}
 0x103   :  { %s362_s30 = smov 256   ;;  %s363_s4 = smov 16  }
 0x104   :  { %267 = dma.vmem_to_hbm [thread:$0]  %s262_s23, 1024, %s456_s3, [#allocation4], %s362_s30, %s362_s30, %s363_s4  }
 0x105   :  { %358 = dma.done.wait [#allocation4], 1024  }
 0x106   :  { %359 = vsyncadd [#allocation4], 4294966272 }
 0x107   :  { %271 = vsyncpa [#allocation4], 1 }

</bundles_post_ra>
